<compile_context>
chip_gen: v7x
topology: tpu7x:2x2x1
jax: 0.10.0
libtpu: 0.0.40
codegen_flags: <defaults>
</compile_context>

<pallas_src>
import math
from functools import partial

import jax
import jax.numpy as jnp
from jax import lax
from jax.experimental import pallas as pl
from jax.experimental.pallas import tpu as pltpu

d_model = 512
d_ff = 1024
LN_EPS = 1e-5  # nn.LayerNorm default


def _round_up(n, m):
    return ((n + m - 1) // m) * m


def _gelu_exact(x):
    # PyTorch nn.GELU() default = exact erf-based GELU.
    return 0.5 * x * (1.0 + lax.erf(x * (1.0 / math.sqrt(2.0))))


def ffn_kernel(x_ref, w1_ref, b1_ref, w2_ref, b2_ref, gamma_ref, beta_ref, o_ref):
    x_f32 = x_ref[...].astype(jnp.float32)                 # [bm, d_model] residual path
    x_mm = x_ref[...].astype(w1_ref.dtype)                 # bf16 MXU fast path

    # conv1 (1x1) == matmul over channels, + bias, GELU   (bf16 x bf16 -> f32 acc)
    h = jnp.dot(x_mm, w1_ref[...], preferred_element_type=jnp.float32)   # [bm, d_ff]
    h = _gelu_exact(h + b1_ref[...])

    # conv2 (1x1) == matmul over channels, + bias, GELU
    y = jnp.dot(h.astype(w2_ref.dtype), w2_ref[...],
                preferred_element_type=jnp.float32)                      # [bm, d_model]
    y = _gelu_exact(y + b2_ref[...])

    # residual add + LayerNorm over last dim (d_model), all in f32
    y = y + x_f32
    mean = jnp.mean(y, axis=-1, keepdims=True)
    var = jnp.mean(jnp.square(y - mean), axis=-1, keepdims=True)
    normed = (y - mean) * lax.rsqrt(var + LN_EPS)
    o_ref[...] = (normed * gamma_ref[...] + beta_ref[...]).astype(o_ref.dtype)


@partial(jax.jit, static_argnames=("block_m", "mm_dtype"))
def poswise_ffn(x, w1, b1, w2, b2, gamma, beta, *, block_m=512,
                mm_dtype=jnp.bfloat16):
    """x: [B, S, d_model]; w1: [d_model, d_ff]; w2: [d_ff, d_model]."""
    B, S, D = x.shape
    F = w1.shape[1]
    M = B * S

    # Row tile: fixed size (multiple of 8 sublanes); shrink for tiny demo inputs.
    bm = _round_up(min(block_m, M), 8)
    M_pad = _round_up(M, bm)

    x2 = x.reshape(M, D)
    if M_pad != M:
        x2 = jnp.pad(x2, ((0, M_pad - M), (0, 0)))

    w1_mm = w1.astype(mm_dtype)
    w2_mm = w2.astype(mm_dtype)
    b1_2 = b1.reshape(1, F).astype(jnp.float32)
    b2_2 = b2.reshape(1, D).astype(jnp.float32)
    gamma_2 = gamma.reshape(1, D).astype(jnp.float32)
    beta_2 = beta.reshape(1, D).astype(jnp.float32)

    out = pl.pallas_call(
        ffn_kernel,
        out_shape=jax.ShapeDtypeStruct((M_pad, D), x.dtype),
        grid_spec=pltpu.PrefetchScalarGridSpec(
            num_scalar_prefetch=0,
            grid=(M_pad // bm,),
            in_specs=[
                pl.BlockSpec((bm, D), lambda i: (i, 0)),   # x rows (pipelined)
                pl.BlockSpec((D, F), lambda i: (0, 0)),    # W1 (bf16, resident)
                pl.BlockSpec((1, F), lambda i: (0, 0)),    # b1
                pl.BlockSpec((F, D), lambda i: (0, 0)),    # W2 (bf16, resident)
                pl.BlockSpec((1, D), lambda i: (0, 0)),    # b2
                pl.BlockSpec((1, D), lambda i: (0, 0)),    # gamma
                pl.BlockSpec((1, D), lambda i: (0, 0)),    # beta
            ],
            out_specs=pl.BlockSpec((bm, D), lambda i: (i, 0)),
        ),
        compiler_params=pltpu.CompilerParams(
            dimension_semantics=("parallel",),            # rows independent -> megacore
            vmem_limit_bytes=32 * 1024 * 1024,
        ),
    )(x2, w1_mm, b1_2, w2_mm, b2_2, gamma_2, beta_2)

    return out[:M].reshape(B, S, D)


def init_params(key):
    """Deterministic init mirroring PyTorch Conv1d defaults
    (U(-1/sqrt(fan_in), 1/sqrt(fan_in))) and LayerNorm defaults."""
    k1, k2, k3, k4 = jax.random.split(key, 4)
    bound1 = 1.0 / math.sqrt(d_model)
    bound2 = 1.0 / math.sqrt(d_ff)
    # conv1.weight is [d_ff, d_model, 1] in torch; stored transposed as [d_model, d_ff]
    w1 = jax.random.uniform(k1, (d_model, d_ff), jnp.float32, -bound1, bound1)
    b1 = jax.random.uniform(k2, (d_ff,), jnp.float32, -bound1, bound1)
    # conv2.weight is [d_model, d_ff, 1]; stored transposed as [d_ff, d_model]
    w2 = jax.random.uniform(k3, (d_ff, d_model), jnp.float32, -bound2, bound2)
    b2 = jax.random.uniform(k4, (d_model,), jnp.float32, -bound2, bound2)
    gamma = jnp.ones((d_model,), jnp.float32)   # LayerNorm weight
    beta = jnp.zeros((d_model,), jnp.float32)   # LayerNorm bias
    return w1, b1, w2, b2, gamma, beta


def reference(x, w1, b1, w2, b2, gamma, beta, mm_dtype=jnp.float32):
    """Pure-JAX reference of the PyTorch forward. mm_dtype controls the matmul
    input precision so we can match the kernel's bf16 MXU path exactly."""
    h = jnp.einsum("bsd,df->bsf", x.astype(mm_dtype), w1.astype(mm_dtype),
                   preferred_element_type=jnp.float32)
    h = _gelu_exact(h + b1)
    y = jnp.einsum("bsf,fd->bsd", h.astype(mm_dtype), w2.astype(mm_dtype),
                   preferred_element_type=jnp.float32)
    y = _gelu_exact(y + b2)
    y = y + x.astype(jnp.float32)
    mean = jnp.mean(y, axis=-1, keepdims=True)
    var = jnp.mean(jnp.square(y - mean), axis=-1, keepdims=True)
    return (y - mean) * lax.rsqrt(var + LN_EPS) * gamma + beta


if __name__ == "__main__":
    key = jax.random.PRNGKey(0)
    kx, kp, kx2 = jax.random.split(key, 3)
    params = init_params(kp)

    # Small demo shape: [batch=2, seq=8, d_model=512]
    B, S = 2, 8
    x = jax.random.normal(kx, (B, S, d_model), jnp.float32)
    out = poswise_ffn(x, *params)
    jax.block_until_ready(out)
    assert out.shape == (B, S, d_model)

    ref_bf16 = reference(x, *params, mm_dtype=jnp.bfloat16)   # same matmul precision
    ref_f32 = reference(x, *params, mm_dtype=jnp.float32)     # full-precision sanity
    assert jnp.allclose(out, ref_bf16, atol=5e-3, rtol=5e-3), "mismatch vs bf16 reference"
    assert jnp.allclose(out, ref_f32, atol=5e-2, rtol=5e-2), "mismatch vs f32 reference"

    # Larger ragged case: exercises row padding + a multi-step pipelined grid
    # (M = 1200 -> padded to 1536, grid = (3,)).
    B2, S2 = 4, 300
    x2 = jax.random.normal(kx2, (B2, S2, d_model), jnp.float32)
    out2 = poswise_ffn(x2, *params)
    jax.block_until_ready(out2)
    assert out2.shape == (B2, S2, d_model)
    ref2 = reference(x2, *params, mm_dtype=jnp.bfloat16)
    assert jnp.allclose(out2, ref2, atol=5e-3, rtol=5e-3), "mismatch vs reference (tiled)"

    print("KERNEL_OK")
</pallas_src>

<mosaic_0001>
module attributes {stable_mosaic.version = 11 : i64} {
  func.func @ffn_kernel(%arg0: i32, %arg1: memref<16x512xf32, #tpu.memory_space<vmem>>, %arg2: memref<512x1024xbf16, #tpu.memory_space<vmem>>, %arg3: memref<1x1024xf32, #tpu.memory_space<vmem>>, %arg4: memref<1024x512xbf16, #tpu.memory_space<vmem>>, %arg5: memref<1x512xf32, #tpu.memory_space<vmem>>, %arg6: memref<1x512xf32, #tpu.memory_space<vmem>>, %arg7: memref<1x512xf32, #tpu.memory_space<vmem>>, %arg8: memref<16x512xf32, #tpu.memory_space<vmem>>) attributes {dimension_semantics = [#tpu.dimension_semantics<parallel>], iteration_bounds = array<i64: 1>, scalar_prefetch = 0 : i64, scratch_operands = 0 : i64, tpu.core_type = #tpu.core_type<tc>, window_params = [{transform_indices = @transform_0, window_bounds = array<i64: 16, 512>}, {pipeline_mode = #tpu.pipeline_mode<synchronous>, transform_indices = @transform_1, window_bounds = array<i64: 512, 1024>}, {pipeline_mode = #tpu.pipeline_mode<synchronous>, transform_indices = @transform_2, window_bounds = array<i64: 1, 1024>}, {pipeline_mode = #tpu.pipeline_mode<synchronous>, transform_indices = @transform_3, window_bounds = array<i64: 1024, 512>}, {pipeline_mode = #tpu.pipeline_mode<synchronous>, transform_indices = @transform_4, window_bounds = array<i64: 1, 512>}, {pipeline_mode = #tpu.pipeline_mode<synchronous>, transform_indices = @transform_5, window_bounds = array<i64: 1, 512>}, {pipeline_mode = #tpu.pipeline_mode<synchronous>, transform_indices = @transform_6, window_bounds = array<i64: 1, 512>}, {transform_indices = @transform_7, window_bounds = array<i64: 16, 512>}]} {
    %c0 = arith.constant 0 : index
    %c0_0 = arith.constant 0 : index
    %0 = vector.load %arg1[%c0, %c0_0] : memref<16x512xf32, #tpu.memory_space<vmem>>, vector<16x512xf32>
    %c0_1 = arith.constant 0 : index
    %c0_2 = arith.constant 0 : index
    %1 = vector.load %arg1[%c0_1, %c0_2] : memref<16x512xf32, #tpu.memory_space<vmem>>, vector<16x512xf32>
    %2 = arith.truncf %1 : vector<16x512xf32> to vector<16x512xbf16>
    %c0_3 = arith.constant 0 : index
    %c0_4 = arith.constant 0 : index
    %3 = vector.load %arg2[%c0_3, %c0_4] : memref<512x1024xbf16, #tpu.memory_space<vmem>>, vector<512x1024xbf16>
    %cst = arith.constant dense<0.000000e+00> : vector<16x1024xf32>
    %4 = tpu.matmul %2, %3, %cst {dimension_numbers = #tpu.dot_dimension_numbers<[1], [0], [0], [1], [0, 0, 1, 1], [], []>} : vector<16x512xbf16>, vector<512x1024xbf16>, vector<16x1024xf32> -> vector<16x1024xf32>
    %c0_5 = arith.constant 0 : index
    %c0_6 = arith.constant 0 : index
    %5 = vector.load %arg3[%c0_5, %c0_6] : memref<1x1024xf32, #tpu.memory_space<vmem>>, vector<1x1024xf32>
    %6 = vector.broadcast %5 : vector<1x1024xf32> to vector<16x1024xf32>
    %7 = arith.addf %4, %6 : vector<16x1024xf32>
    %cst_7 = arith.constant 5.000000e-01 : f32
    %8 = vector.broadcast %cst_7 : f32 to vector<16x1024xf32>
    %9 = arith.mulf %8, %7 : vector<16x1024xf32>
    %cst_8 = arith.constant 0.707106769 : f32
    %10 = vector.broadcast %cst_8 : f32 to vector<16x1024xf32>
    %11 = arith.mulf %7, %10 : vector<16x1024xf32>
    %12 = math.erf %11 : vector<16x1024xf32>
    %cst_9 = arith.constant 1.000000e+00 : f32
    %13 = vector.broadcast %cst_9 : f32 to vector<16x1024xf32>
    %14 = arith.addf %13, %12 : vector<16x1024xf32>
    %15 = arith.mulf %9, %14 : vector<16x1024xf32>
    %16 = arith.truncf %15 : vector<16x1024xf32> to vector<16x1024xbf16>
    %c0_10 = arith.constant 0 : index
    %c0_11 = arith.constant 0 : index
    %17 = vector.load %arg4[%c0_10, %c0_11] : memref<1024x512xbf16, #tpu.memory_space<vmem>>, vector<1024x512xbf16>
    %cst_12 = arith.constant dense<0.000000e+00> : vector<16x512xf32>
    %18 = tpu.matmul %16, %17, %cst_12 {dimension_numbers = #tpu.dot_dimension_numbers<[1], [0], [0], [1], [0, 0, 1, 1], [], []>} : vector<16x1024xbf16>, vector<1024x512xbf16>, vector<16x512xf32> -> vector<16x512xf32>
    %c0_13 = arith.constant 0 : index
    %c0_14 = arith.constant 0 : index
    %19 = vector.load %arg5[%c0_13, %c0_14] : memref<1x512xf32, #tpu.memory_space<vmem>>, vector<1x512xf32>
    %20 = vector.broadcast %19 : vector<1x512xf32> to vector<16x512xf32>
    %21 = arith.addf %18, %20 : vector<16x512xf32>
    %cst_15 = arith.constant 5.000000e-01 : f32
    %22 = vector.broadcast %cst_15 : f32 to vector<16x512xf32>
    %23 = arith.mulf %22, %21 : vector<16x512xf32>
    %cst_16 = arith.constant 0.707106769 : f32
    %24 = vector.broadcast %cst_16 : f32 to vector<16x512xf32>
    %25 = arith.mulf %21, %24 : vector<16x512xf32>
    %26 = math.erf %25 : vector<16x512xf32>
    %cst_17 = arith.constant 1.000000e+00 : f32
    %27 = vector.broadcast %cst_17 : f32 to vector<16x512xf32>
    %28 = arith.addf %27, %26 : vector<16x512xf32>
    %29 = arith.mulf %23, %28 : vector<16x512xf32>
    %30 = arith.addf %29, %0 : vector<16x512xf32>
    %cst_18 = arith.constant dense<0.000000e+00> : vector<16xf32>
    %31 = vector.multi_reduction <add>, %30, %cst_18 [1] : vector<16x512xf32> to vector<16xf32>
    %32 = vector.shape_cast %31 : vector<16xf32> to vector<16x1xf32>
    %cst_19 = arith.constant 5.120000e+02 : f32
    %33 = vector.broadcast %cst_19 : f32 to vector<16x1xf32>
    %34 = arith.divf %32, %33 : vector<16x1xf32>
    %35 = vector.broadcast %34 : vector<16x1xf32> to vector<16x512xf32>
    %36 = arith.subf %30, %35 : vector<16x512xf32>
    %37 = arith.mulf %36, %36 : vector<16x512xf32>
    %cst_20 = arith.constant dense<0.000000e+00> : vector<16xf32>
    %38 = vector.multi_reduction <add>, %37, %cst_20 [1] : vector<16x512xf32> to vector<16xf32>
    %39 = vector.shape_cast %38 : vector<16xf32> to vector<16x1xf32>
    %cst_21 = arith.constant 5.120000e+02 : f32
    %40 = vector.broadcast %cst_21 : f32 to vector<16x1xf32>
    %41 = arith.divf %39, %40 : vector<16x1xf32>
    %42 = vector.broadcast %34 : vector<16x1xf32> to vector<16x512xf32>
    %43 = arith.subf %30, %42 : vector<16x512xf32>
    %cst_22 = arith.constant 9.99999974E-6 : f32
    %44 = vector.broadcast %cst_22 : f32 to vector<16x1xf32>
    %45 = arith.addf %41, %44 : vector<16x1xf32>
    %46 = math.rsqrt %45 : vector<16x1xf32>
    %47 = vector.broadcast %46 : vector<16x1xf32> to vector<16x512xf32>
    %48 = arith.mulf %43, %47 : vector<16x512xf32>
    %c0_23 = arith.constant 0 : index
    %c0_24 = arith.constant 0 : index
    %49 = vector.load %arg6[%c0_23, %c0_24] : memref<1x512xf32, #tpu.memory_space<vmem>>, vector<1x512xf32>
    %50 = vector.broadcast %49 : vector<1x512xf32> to vector<16x512xf32>
    %51 = arith.mulf %48, %50 : vector<16x512xf32>
    %c0_25 = arith.constant 0 : index
    %c0_26 = arith.constant 0 : index
    %52 = vector.load %arg7[%c0_25, %c0_26] : memref<1x512xf32, #tpu.memory_space<vmem>>, vector<1x512xf32>
    %53 = vector.broadcast %52 : vector<1x512xf32> to vector<16x512xf32>
    %54 = arith.addf %51, %53 : vector<16x512xf32>
    %c0_27 = arith.constant 0 : index
    %c0_28 = arith.constant 0 : index
    %55 = vector.load %arg8[%c0_27, %c0_28] : memref<16x512xf32, #tpu.memory_space<vmem>>, vector<16x512xf32>
    tpu.vector_store %arg8[%c0_27, %c0_28], %54 {strides = array<i32>} : memref<16x512xf32, #tpu.memory_space<vmem>>, vector<16x512xf32>,
    return
  }
  func.func @transform_0(%arg0: i32) -> (i32, i32) {
    %c0_i32 = arith.constant 0 : i32
    %c0_i32_0 = arith.constant 0 : i32
    return %arg0, %c0_i32 : i32, i32
  }
  func.func @transform_1(%arg0: i32) -> (i32, i32) {
    %c0_i32 = arith.constant 0 : i32
    %c0_i32_0 = arith.constant 0 : i32
    %c0_i32_1 = arith.constant 0 : i32
    return %c0_i32, %c0_i32_0 : i32, i32
  }
  func.func @transform_2(%arg0: i32) -> (i32, i32) {
    %c0_i32 = arith.constant 0 : i32
    %c0_i32_0 = arith.constant 0 : i32
    %c0_i32_1 = arith.constant 0 : i32
    return %c0_i32, %c0_i32_0 : i32, i32
  }
  func.func @transform_3(%arg0: i32) -> (i32, i32) {
    %c0_i32 = arith.constant 0 : i32
    %c0_i32_0 = arith.constant 0 : i32
    %c0_i32_1 = arith.constant 0 : i32
    return %c0_i32, %c0_i32_0 : i32, i32
  }
  func.func @transform_4(%arg0: i32) -> (i32, i32) {
    %c0_i32 = arith.constant 0 : i32
    %c0_i32_0 = arith.constant 0 : i32
    %c0_i32_1 = arith.constant 0 : i32
    return %c0_i32, %c0_i32_0 : i32, i32
  }
  func.func @transform_5(%arg0: i32) -> (i32, i32) {
    %c0_i32 = arith.constant 0 : i32
    %c0_i32_0 = arith.constant 0 : i32
    %c0_i32_1 = arith.constant 0 : i32
    return %c0_i32, %c0_i32_0 : i32, i32
  }
  func.func @transform_6(%arg0: i32) -> (i32, i32) {
    %c0_i32 = arith.constant 0 : i32
    %c0_i32_0 = arith.constant 0 : i32
    %c0_i32_1 = arith.constant 0 : i32
    return %c0_i32, %c0_i32_0 : i32, i32
  }
  func.func @transform_7(%arg0: i32) -> (i32, i32) {
    %c0_i32 = arith.constant 0 : i32
    %c0_i32_0 = arith.constant 0 : i32
    return %arg0, %c0_i32 : i32, i32
  }
}

</mosaic_0001>

<bundles_post_ra>
// kernel: poswise_ffn.1
= control target key start
LH: loop header
LB: loop body
LE: loop exit
PB: predicated region body
PF: predicated region fallthrough
CT: control target
= control target key end

     0   :  { %s6938_s0 = inlined_call_operand.vmem [shape: f32[16,512], index: 0, kind: input, shape index: {}]   ;;  %s6939_s1 = inlined_call_operand.vmem [shape: bf16[512,1024], index: 1, kind: input, shape index: {}]   ;;  %s6940_s2 = inlined_call_operand.vmem [shape: f32[1,1024], index: 2, kind: input, shape index: {}]   ;;  %s6941_s3 = inlined_call_operand.vmem [shape: bf16[1024,512], index: 3, kind: input, shape index: {}]   ;;  %s6942_s4 = inlined_call_operand.vmem [shape: f32[1,512], index: 4, kind: input, shape index: {}]   ;;  %s6943_s5 = inlined_call_operand.vmem [shape: f32[1,512], index: 5, kind: input, shape index: {}]   ;;  %s6944_s6 = inlined_call_operand.vmem [shape: f32[1,512], index: 6, kind: input, shape index: {}]   ;;  %s6945_s7 = inlined_call_operand.hbm [shape: f32[16,512], index: 7, kind: output, shape index: {}]  }
   0x1   :  { %v39_v0 = vld [vmem:[%s6939_s1] sm:$0xff]  ;;  %v40_v2 = vld [vmem:[%s6939_s1 + $0x8] sm:$0xff] }
   0x2   :  { %v43_v1 = vld [vmem:[%s6939_s1 + $0x20] sm:$0xff]  ;;  %v44_v4 = vld [vmem:[%s6939_s1 + $0x28] sm:$0xff] }
   0x3   :  { %v4137_v3 = vcombine.high %v39_v0, %v43_v1  ;;  %v4136_v5 = vcombine.low %v39_v0, %v43_v1  ;;  %v47_v6 = vld [vmem:[%s6939_s1 + $0x40] sm:$0xff]  ;;  %v4139_v8 = vcombine.high %v40_v2, %v44_v4  ;;  %v4138_v9 = vcombine.low %v40_v2, %v44_v4  ;;  %v48_v11 = vld [vmem:[%s6939_s1 + $0x48] sm:$0xff] }
   0x4   :  { %v51_v7 = vld [vmem:[%s6939_s1 + $0x60] sm:$0xff]  ;;  %v52_v12 = vld [vmem:[%s6939_s1 + $0x68] sm:$0xff] }
   0x5   :  { %v4145_v10 = vcombine.high %v47_v6, %v51_v7  ;;  %v55_v13 = vld [vmem:[%s6939_s1 + $0x80] sm:$0xff]  ;;  %1617 = vmatprep.subr.bf16.mxu0 %v4137_v3  ;;  %v4147_v14 = vcombine.high %v48_v11, %v52_v12  ;;  %v56_v16 = vld [vmem:[%s6939_s1 + $0x88] sm:$0xff]  ;;  %1703 = vmatprep.subr.bf16.mxu1 %v4139_v8  ;;  %v4144_v18 = vcombine.low %v47_v6, %v51_v7 }
   0x6   :  { %v59_v15 = vld [vmem:[%s6939_s1 + $0xa0] sm:$0xff]  ;;  %v60_v17 = vld [vmem:[%s6939_s1 + $0xa8] sm:$0xff]  ;;  %1618 = vmatpush1.bf16.msra.mxu0 %v4136_v5  ;;  %1704 = vmatpush1.bf16.msra.mxu1 %v4138_v9  ;;  %v4146_v19 = vcombine.low %v48_v11, %v52_v12 }
   0x7   :  { %1619 = vmatprep.subr.bf16.mxu0 %v4145_v10  ;;  %v4153_v20 = vcombine.high %v55_v13, %v59_v15  ;;  %1705 = vmatprep.subr.bf16.mxu1 %v4147_v14  ;;  %v4155_v21 = vcombine.high %v56_v16, %v60_v17  ;;  %v63_v22 = vld [vmem:[%s6939_s1 + $0xc0] sm:$0xff]  ;;  %v64_v24 = vld [vmem:[%s6939_s1 + $0xc8] sm:$0xff]  ;;  %v4152_v26 = vcombine.low %v55_v13, %v59_v15 }
   0x8   :  { %v67_v23 = vld [vmem:[%s6939_s1 + $0xe0] sm:$0xff]  ;;  %v68_v25 = vld [vmem:[%s6939_s1 + $0xe8] sm:$0xff]  ;;  %v4154_v27 = vcombine.low %v56_v16, %v60_v17 }
   0x9   :  { %v4161_v28 = vcombine.high %v63_v22, %v67_v23  ;;  %v4163_v29 = vcombine.high %v64_v24, %v68_v25  ;;  %v71_v30 = vld [vmem:[%s6939_s1 + $0x100] sm:$0xff]  ;;  %v72_v32 = vld [vmem:[%s6939_s1 + $0x108] sm:$0xff]  ;;  %v4160_v34 = vcombine.low %v63_v22, %v67_v23  ;;  %v4162_v35 = vcombine.low %v64_v24, %v68_v25 }
   0xa   :  { %1620 = vmatpush1.bf16.msra.mxu0 %v4144_v18  ;;  %1706 = vmatpush1.bf16.msra.mxu1 %v4146_v19  ;;  %v75_v31 = vld [vmem:[%s6939_s1 + $0x120] sm:$0xff]  ;;  %v76_v33 = vld [vmem:[%s6939_s1 + $0x128] sm:$0xff] }
   0xb   :  { %1621 = vmatprep.subr.bf16.mxu0 %v4153_v20  ;;  %1707 = vmatprep.subr.bf16.mxu1 %v4155_v21  ;;  %v4169_v36 = vcombine.high %v71_v30, %v75_v31  ;;  %v4171_v37 = vcombine.high %v72_v32, %v76_v33  ;;  %v79_v38 = vld [vmem:[%s6939_s1 + $0x140] sm:$0xff]  ;;  %v80_v40 = vld [vmem:[%s6939_s1 + $0x148] sm:$0xff]  ;;  %v4168_v42 = vcombine.low %v71_v30, %v75_v31 }
   0xc   :  { %v83_v39 = vld [vmem:[%s6939_s1 + $0x160] sm:$0xff]  ;;  %v84_v41 = vld [vmem:[%s6939_s1 + $0x168] sm:$0xff]  ;;  %v4170_v43 = vcombine.low %v72_v32, %v76_v33 }
   0xd   :  { %v4177_v44 = vcombine.high %v79_v38, %v83_v39  ;;  %v4179_v45 = vcombine.high %v80_v40, %v84_v41  ;;  %v87_v46 = vld [vmem:[%s6939_s1 + $0x180] sm:$0xff]  ;;  %v88_v48 = vld [vmem:[%s6939_s1 + $0x188] sm:$0xff]  ;;  %v4176_v50 = vcombine.low %v79_v38, %v83_v39  ;;  %v4178_v51 = vcombine.low %v80_v40, %v84_v41 }
   0xe   :  { %1622 = vmatpush1.bf16.msra.mxu0 %v4152_v26  ;;  %1708 = vmatpush1.bf16.msra.mxu1 %v4154_v27  ;;  %v91_v47 = vld [vmem:[%s6939_s1 + $0x1a0] sm:$0xff]  ;;  %v92_v49 = vld [vmem:[%s6939_s1 + $0x1a8] sm:$0xff] }
   0xf   :  { %1623 = vmatprep.subr.bf16.mxu0 %v4161_v28  ;;  %1709 = vmatprep.subr.bf16.mxu1 %v4163_v29  ;;  %v4185_v52 = vcombine.high %v87_v46, %v91_v47  ;;  %v28_v53 = vld [vmem:[%s6938_s0 + $0x8] sm:$0xff]  ;;  %v4187_v55 = vcombine.high %v88_v48, %v92_v49  ;;  %v95_v56 = vld [vmem:[%s6939_s1 + $0x1c0] sm:$0xff]  ;;  %v4184_v61 = vcombine.low %v87_v46, %v91_v47 }
  0x10   :  { %v32_v54 = vld [vmem:[%s6938_s0 + $0x28] sm:$0xff]  ;;  %v99_v57 = vld [vmem:[%s6939_s1 + $0x1e0] sm:$0xff]  ;;  %v4186_v62 = vcombine.low %v88_v48, %v92_v49 }
  0x11   :  { %v5322_v58 = vpack.c.bf16 %v32_v54, %v28_v53  ;;  %v96_v59 = vld [vmem:[%s6939_s1 + $0x1c8] sm:$0xff]  ;;  %v4193_v63 = vcombine.high %v95_v56, %v99_v57  ;;  %v103_v1 = vld [vmem:[%s6939_s1 + $0x200] sm:$0xff]  ;;  %v4192_v5 = vcombine.low %v95_v56, %v99_v57 }
  0x12   :  { %1624 = vmatpush1.bf16.msra.mxu0 %v4160_v34  ;;  %1710 = vmatpush1.bf16.msra.mxu1 %v4162_v35  ;;  %v100_v60 = vld [vmem:[%s6939_s1 + $0x1e8] sm:$0xff]  ;;  %v107_v2 = vld [vmem:[%s6939_s1 + $0x220] sm:$0xff] }
  0x13   :  { %1625 = vmatprep.subr.bf16.mxu0 %v4169_v36  ;;  %1711 = vmatprep.subr.bf16.mxu1 %v4171_v37  ;;  %v4195_v0 = vcombine.high %v96_v59, %v100_v60  ;;  %v104_v3 = vld [vmem:[%s6939_s1 + $0x208] sm:$0xff]  ;;  %v4194_v6 = vcombine.low %v96_v59, %v100_v60  ;;  %v4201_v7 = vcombine.high %v103_v1, %v107_v2  ;;  %v111_v9 = vld [vmem:[%s6939_s1 + $0x240] sm:$0xff] }
  0x14   :  { %1649 = vmatprep.mubr.bf16.mxu0 %v5322_v58  ;;  %1735 = vmatprep.mubr.bf16.mxu1 %v5322_v58  ;;  %v108_v4 = vld [vmem:[%s6939_s1 + $0x228] sm:$0xff]  ;;  %v115_v10 = vld [vmem:[%s6939_s1 + $0x260] sm:$0xff]  ;;  %v4200_v13 = vcombine.low %v103_v1, %v107_v2 }
  0x15   :  { %v4203_v8 = vcombine.high %v104_v3, %v108_v4  ;;  %v112_v11 = vld [vmem:[%s6939_s1 + $0x248] sm:$0xff]  ;;  %v4202_v14 = vcombine.low %v104_v3, %v108_v4  ;;  %v4209_v15 = vcombine.high %v111_v9, %v115_v10  ;;  %v119_v17 = vld [vmem:[%s6939_s1 + $0x280] sm:$0xff]  ;;  %v4208_v21 = vcombine.low %v111_v9, %v115_v10 }
  0x16   :  { %1626 = vmatpush1.bf16.msra.mxu0 %v4168_v42  ;;  %1712 = vmatpush1.bf16.msra.mxu1 %v4170_v43  ;;  %v116_v12 = vld [vmem:[%s6939_s1 + $0x268] sm:$0xff]  ;;  %v123_v18 = vld [vmem:[%s6939_s1 + $0x2a0] sm:$0xff] }
  0x17   :  { %1627 = vmatprep.subr.bf16.mxu0 %v4177_v44  ;;  %1713 = vmatprep.subr.bf16.mxu1 %v4179_v45  ;;  %v4211_v16 = vcombine.high %v112_v11, %v116_v12  ;;  %v120_v19 = vld [vmem:[%s6939_s1 + $0x288] sm:$0xff]  ;;  %v4210_v22 = vcombine.low %v112_v11, %v116_v12  ;;  %v4217_v23 = vcombine.high %v119_v17, %v123_v18  ;;  %v127_v25 = vld [vmem:[%s6939_s1 + $0x2c0] sm:$0xff] }
  0x18   :  { %v124_v20 = vld [vmem:[%s6939_s1 + $0x2a8] sm:$0xff]  ;;  %v131_v26 = vld [vmem:[%s6939_s1 + $0x2e0] sm:$0xff]  ;;  %v4216_v29 = vcombine.low %v119_v17, %v123_v18  ;;  %v30_v17 = vld [vmem:[%s6938_s0 + $0x18] sm:$0xff] }
  0x19   :  { %v4219_v24 = vcombine.high %v120_v19, %v124_v20  ;;  %v128_v27 = vld [vmem:[%s6939_s1 + $0x2c8] sm:$0xff]  ;;  %v4218_v30 = vcombine.low %v120_v19, %v124_v20  ;;  %v4225_v31 = vcombine.high %v127_v25, %v131_v26  ;;  %v135_v33 = vld [vmem:[%s6939_s1 + $0x300] sm:$0xff]  ;;  %v4224_v37 = vcombine.low %v127_v25, %v131_v26  ;;  %v34_v18 = vld [vmem:[%s6938_s0 + $0x38] sm:$0xff] }
  0x1a   :  { %1628 = vmatpush1.bf16.msra.mxu0 %v4176_v50  ;;  %1714 = vmatpush1.bf16.msra.mxu1 %v4178_v51  ;;  %v132_v28 = vld [vmem:[%s6939_s1 + $0x2e8] sm:$0xff]  ;;  %v139_v34 = vld [vmem:[%s6939_s1 + $0x320] sm:$0xff]  ;;  %v5472_v25 = vpack.c.bf16 %v34_v18, %v30_v17 }
  0x1b   :  { %1629 = vmatprep.subr.bf16.mxu0 %v4185_v52  ;;  %1715 = vmatprep.subr.bf16.mxu1 %v4187_v55  ;;  %v4227_v32 = vcombine.high %v128_v27, %v132_v28  ;;  %v136_v35 = vld [vmem:[%s6939_s1 + $0x308] sm:$0xff]  ;;  %v4226_v38 = vcombine.low %v128_v27, %v132_v28  ;;  %v4233_v39 = vcombine.high %v135_v33, %v139_v34  ;;  %v143_v41 = vld [vmem:[%s6939_s1 + $0x340] sm:$0xff] }
  0x1c   :  { %v140_v36 = vld [vmem:[%s6939_s1 + $0x328] sm:$0xff]  ;;  %v147_v42 = vld [vmem:[%s6939_s1 + $0x360] sm:$0xff]  ;;  %v4232_v45 = vcombine.low %v135_v33, %v139_v34 }
  0x1d   :  { %v4235_v40 = vcombine.high %v136_v35, %v140_v36  ;;  %v144_v43 = vld [vmem:[%s6939_s1 + $0x348] sm:$0xff]  ;;  %v4234_v46 = vcombine.low %v136_v35, %v140_v36  ;;  %v4241_v47 = vcombine.high %v143_v41, %v147_v42  ;;  %v151_v49 = vld [vmem:[%s6939_s1 + $0x380] sm:$0xff]  ;;  %v4240_v53 = vcombine.low %v143_v41, %v147_v42 }
  0x1e   :  { %1630 = vmatpush1.bf16.msra.mxu0 %v4184_v61  ;;  %1716 = vmatpush1.bf16.msra.mxu1 %v4186_v62  ;;  %v148_v44 = vld [vmem:[%s6939_s1 + $0x368] sm:$0xff]  ;;  %v155_v50 = vld [vmem:[%s6939_s1 + $0x3a0] sm:$0xff] }
  0x1f   :  { %1631 = vmatprep.subr.bf16.mxu0 %v4193_v63  ;;  %1717 = vmatprep.subr.bf16.mxu1 %v4195_v0  ;;  %v4243_v48 = vcombine.high %v144_v43, %v148_v44  ;;  %v152_v51 = vld [vmem:[%s6939_s1 + $0x388] sm:$0xff]  ;;  %v4242_v54 = vcombine.low %v144_v43, %v148_v44  ;;  %v4249_v55 = vcombine.high %v151_v49, %v155_v50  ;;  %v159_v57 = vld [vmem:[%s6939_s1 + $0x3c0] sm:$0xff] }
  0x20   :  { %v156_v52 = vld [vmem:[%s6939_s1 + $0x3a8] sm:$0xff]  ;;  %v163_v59 = vld [vmem:[%s6939_s1 + $0x3e0] sm:$0xff]  ;;  %v4248_v62 = vcombine.low %v151_v49, %v155_v50 }
  0x21   :  { %v4251_v56 = vcombine.high %v152_v51, %v156_v52  ;;  %v160_v60 = vld [vmem:[%s6939_s1 + $0x3c8] sm:$0xff]  ;;  %v4250_v63 = vcombine.low %v152_v51, %v156_v52  ;;  %v4257_v0 = vcombine.high %v159_v57, %v163_v59  ;;  %v167_v2 = vld [vmem:[%s6939_s1 + $0x400] sm:$0xff] }
  0x22   :  { %1632 = vmatpush1.bf16.msra.mxu0 %v4192_v5  ;;  %1718 = vmatpush1.bf16.msra.mxu1 %v4194_v6  ;;  %v164_v61 = vld [vmem:[%s6939_s1 + $0x3e8] sm:$0xff]  ;;  %v171_v3 = vld [vmem:[%s6939_s1 + $0x420] sm:$0xff]  ;;  %v4256_v6 = vcombine.low %v159_v57, %v163_v59 }
  0x23   :  { %1633 = vmatprep.subr.bf16.mxu0 %v4201_v7  ;;  %1719 = vmatprep.subr.bf16.mxu1 %v4203_v8  ;;  %v4259_v1 = vcombine.high %v160_v60, %v164_v61  ;;  %v168_v4 = vld [vmem:[%s6939_s1 + $0x408] sm:$0xff]  ;;  %v27_v7 = vld [vmem:[%s6938_s0] sm:$0xff]  ;;  %v4258_v9 = vcombine.low %v160_v60, %v164_v61  ;;  %v4265_v10 = vcombine.high %v167_v2, %v171_v3 }
  0x24   :  { %v172_v5 = vld [vmem:[%s6939_s1 + $0x428] sm:$0xff]  ;;  %v31_v8 = vld [vmem:[%s6938_s0 + $0x20] sm:$0xff]  ;;  %v4264_v19 = vcombine.low %v167_v2, %v171_v3 }
  0x25   :  { %v4267_v11 = vcombine.high %v168_v4, %v172_v5  ;;  %v175_v12 = vld [vmem:[%s6939_s1 + $0x440] sm:$0xff]  ;;  %v4266_v20 = vcombine.low %v168_v4, %v172_v5  ;;  %v184_v26 = vld [vmem:[%s6939_s1 + $0x488] sm:$0xff] }
  0x26   :  { %1634 = vmatpush1.bf16.msra.mxu0 %v4200_v13  ;;  %1720 = vmatpush1.bf16.msra.mxu1 %v4202_v14  ;;  %v179_v13 = vld [vmem:[%s6939_s1 + $0x460] sm:$0xff]  ;;  %v176_v14 = vld [vmem:[%s6939_s1 + $0x448] sm:$0xff] }
  0x27   :  { %1635 = vmatprep.subr.bf16.mxu0 %v4209_v15  ;;  %1721 = vmatprep.subr.bf16.mxu1 %v4211_v16  ;;  %v5455_v15 = vpack.c.bf16 %v31_v8, %v27_v7  ;;  %v180_v16 = vld [vmem:[%s6939_s1 + $0x468] sm:$0xff]  ;;  %v4272_v28 = vcombine.low %v175_v12, %v179_v13  ;;  %v231_v8 = vld [vmem:[%s6939_s1 + $0x600] sm:$0xff] }
  0x28   :  { %v188_v27 = vld [vmem:[%s6939_s1 + $0x4a8] sm:$0xff]  ;;  %v239_v17 = vld [vmem:[%s6939_s1 + $0x640] sm:$0xff] }
  0x29   :  { %v192_v33 = vld [vmem:[%s6939_s1 + $0x4c8] sm:$0xff]  ;;  %v4283_v34 = vcombine.high %v184_v26, %v188_v27  ;;  %v243_v18 = vld [vmem:[%s6939_s1 + $0x660] sm:$0xff] }
  0x2a   :  { %1636 = vmatpush1.bf16.msra.mxu0 %v4208_v21  ;;  %1722 = vmatpush1.bf16.msra.mxu1 %v4210_v22  ;;  %v4273_v21 = vcombine.high %v175_v12, %v179_v13  ;;  %v4275_v22 = vcombine.high %v176_v14, %v180_v16  ;;  %v196_v35 = vld [vmem:[%s6939_s1 + $0x4e8] sm:$0xff] }
  0x2b   :  { %1637 = vmatprep.subr.bf16.mxu0 %v4217_v23  ;;  %1723 = vmatprep.subr.bf16.mxu1 %v4219_v24  ;;  %v183_v23 = vld [vmem:[%s6939_s1 + $0x480] sm:$0xff]  ;;  %v200_v41 = vld [vmem:[%s6939_s1 + $0x508] sm:$0xff]  ;;  %v4291_v42 = vcombine.high %v192_v33, %v196_v35 }
  0x2c   :  { %v187_v24 = vld [vmem:[%s6939_s1 + $0x4a0] sm:$0xff]  ;;  %v204_v43 = vld [vmem:[%s6939_s1 + $0x528] sm:$0xff] }
  0x2d   :  { %v4280_v36 = vcombine.low %v183_v23, %v187_v24  ;;  %v208_v49 = vld [vmem:[%s6939_s1 + $0x548] sm:$0xff]  ;;  %v4299_v50 = vcombine.high %v200_v41, %v204_v43 }
  0x2e   :  { %1638 = vmatpush1.bf16.msra.mxu0 %v4216_v29  ;;  %1724 = vmatpush1.bf16.msra.mxu1 %v4218_v30  ;;  %v4274_v29 = vcombine.low %v176_v14, %v180_v16  ;;  %v4281_v30 = vcombine.high %v183_v23, %v187_v24  ;;  %v212_v51 = vld [vmem:[%s6939_s1 + $0x568] sm:$0xff]  ;;  %v4337_v24 = vcombine.high %v239_v17, %v243_v18 }
  0x2f   :  { %1639 = vmatprep.subr.bf16.mxu0 %v4225_v31  ;;  %1725 = vmatprep.subr.bf16.mxu1 %v4227_v32  ;;  %v191_v31 = vld [vmem:[%s6939_s1 + $0x4c0] sm:$0xff]  ;;  %v216_v57 = vld [vmem:[%s6939_s1 + $0x588] sm:$0xff]  ;;  %v4307_v59 = vcombine.high %v208_v49, %v212_v51 }
  0x30   :  { %v195_v32 = vld [vmem:[%s6939_s1 + $0x4e0] sm:$0xff]  ;;  %v220_v60 = vld [vmem:[%s6939_s1 + $0x5a8] sm:$0xff] }
  0x31   :  { %v4288_v44 = vcombine.low %v191_v31, %v195_v32  ;;  %v224_v2 = vld [vmem:[%s6939_s1 + $0x5c8] sm:$0xff]  ;;  %v4315_v3 = vcombine.high %v216_v57, %v220_v60 }
  0x32   :  { %1640 = vmatpush1.bf16.msra.mxu0 %v4224_v37  ;;  %1726 = vmatpush1.bf16.msra.mxu1 %v4226_v38  ;;  %v4282_v37 = vcombine.low %v184_v26, %v188_v27  ;;  %v4289_v38 = vcombine.high %v191_v31, %v195_v32  ;;  %v228_v4 = vld [vmem:[%s6939_s1 + $0x5e8] sm:$0xff]  ;;  %v247_v26 = vld [vmem:[%s6939_s1 + $0x680] sm:$0xff]  ;;  %v4336_v31 = vcombine.low %v239_v17, %v243_v18  ;;  %v33_v17 = vld [vmem:[%s6938_s0 + $0x30] sm:$0xff] }
  0x33   :  { %1641 = vmatprep.subr.bf16.mxu0 %v4233_v39  ;;  %1727 = vmatprep.subr.bf16.mxu1 %v4235_v40  ;;  %v199_v39 = vld [vmem:[%s6939_s1 + $0x500] sm:$0xff]  ;;  %v236_v12 = vld [vmem:[%s6939_s1 + $0x628] sm:$0xff]  ;;  %v4322_v14 = vcombine.low %v224_v2, %v228_v4  ;;  %v46_v18 = vld [vmem:[%s6939_s1 + $0x38] sm:$0xff] }
  0x34   :  { %v203_v40 = vld [vmem:[%s6939_s1 + $0x520] sm:$0xff] }
  0x35   :  { %v4296_v52 = vcombine.low %v199_v39, %v203_v40  ;;  %v251_v27 = vld [vmem:[%s6939_s1 + $0x6a0] sm:$0xff] }
  0x36   :  { %1642 = vmatpush1.bf16.msra.mxu0 %v4232_v45  ;;  %1728 = vmatpush1.bf16.msra.mxu1 %v4234_v46  ;;  %v4290_v45 = vcombine.low %v192_v33, %v196_v35  ;;  %v4297_v46 = vcombine.high %v199_v39, %v203_v40  ;;  %v4345_v33 = vcombine.high %v247_v26, %v251_v27  ;;  %v259_v35 = vld [vmem:[%s6939_s1 + $0x6e0] sm:$0xff] }
  0x37   :  { %1643 = vmatprep.subr.bf16.mxu0 %v4241_v47  ;;  %1729 = vmatprep.subr.bf16.mxu1 %v4243_v48  ;;  %v207_v47 = vld [vmem:[%s6939_s1 + $0x540] sm:$0xff]  ;;  %v4344_v39 = vcombine.low %v247_v26, %v251_v27  ;;  %v54_v27 = vld [vmem:[%s6939_s1 + $0x78] sm:$0xff] }
  0x38   :  { %v211_v48 = vld [vmem:[%s6939_s1 + $0x560] sm:$0xff] }
  0x39   :  { %v4304_v61 = vcombine.low %v207_v47, %v211_v48 }
  0x3a   :  { %1644 = vmatpush1.bf16.msra.mxu0 %v4240_v53  ;;  %1730 = vmatpush1.bf16.msra.mxu1 %v4242_v54  ;;  %v4298_v53 = vcombine.low %v200_v41, %v204_v43  ;;  %v4305_v54 = vcombine.high %v207_v47, %v211_v48  ;;  %v267_v43 = vld [vmem:[%s6939_s1 + $0x720] sm:$0xff] }
  0x3b   :  { %1645 = vmatprep.subr.bf16.mxu0 %v4249_v55  ;;  %1731 = vmatprep.subr.bf16.mxu1 %v4251_v56  ;;  %v215_v55 = vld [vmem:[%s6939_s1 + $0x580] sm:$0xff] }
  0x3c   :  { %v219_v56 = vld [vmem:[%s6939_s1 + $0x5a0] sm:$0xff] }
  0x3d   :  { %v4312_v5 = vcombine.low %v215_v55, %v219_v56 }
  0x3e   :  { %1646 = vmatpush1.bf16.msra.mxu0 %v4248_v62  ;;  %1732 = vmatpush1.bf16.msra.mxu1 %v4250_v63  ;;  %v4306_v62 = vcombine.low %v208_v49, %v212_v51  ;;  %v4313_v63 = vcombine.high %v215_v55, %v219_v56  ;;  %v275_v51 = vld [vmem:[%s6939_s1 + $0x760] sm:$0xff] }
  0x3f   :  { %1647 = vmatprep.subr.bf16.mxu0 %v4257_v0  ;;  %1733 = vmatprep.subr.bf16.mxu1 %v4259_v1  ;;  %v223_v0 = vld [vmem:[%s6939_s1 + $0x5c0] sm:$0xff] }
  0x40   :  { %v227_v1 = vld [vmem:[%s6939_s1 + $0x5e0] sm:$0xff] }
  0x41   :  { %v4321_v7 = vcombine.high %v223_v0, %v227_v1  ;;  %v4320_v13 = vcombine.low %v223_v0, %v227_v1 }
  0x42   :  { %1648 = vmatpush1.bf16.msra.mxu0 %v4256_v6  ;;  %1734 = vmatpush1.bf16.msra.mxu1 %v4258_v9  ;;  %v4314_v6 = vcombine.low %v216_v57, %v220_v60  ;;  %v235_v9 = vld [vmem:[%s6939_s1 + $0x620] sm:$0xff] }
  0x43   :  { %1660 = vmatprep.subr.bf16.mxu0 %v4265_v10  ;;  %1746 = vmatprep.subr.bf16.mxu1 %v4267_v11  ;;  %v232_v10 = vld [vmem:[%s6939_s1 + $0x608] sm:$0xff]  ;;  %v4323_v11 = vcombine.high %v224_v2, %v228_v4  ;;  %v4329_v16 = vcombine.high %v231_v8, %v235_v9  ;;  %v283_v60 = vld [vmem:[%s6939_s1 + $0x7a0] sm:$0xff] }
  0x44   :  { %v4330_v23 = vcombine.low %v232_v10, %v236_v12  ;;  %v291_v4 = vld [vmem:[%s6939_s1 + $0x7e0] sm:$0xff] }
  0x45   :  { %1650 = vmatmul.mubr.bf16.vlgmr.msra.gmra.mrb[0].mxu0 %v5455_v15  ;;  %1736 = vmatmul.mubr.bf16.vlgmr.msra.gmra.mrb[0].mxu1 %v5455_v15 }
  0x46   :  { %1661 = vmatpush1.bf16.msra.mxu0 %v4264_v19  ;;  %1747 = vmatpush1.bf16.msra.mxu1 %v4266_v20  ;;  %v240_v19 = vld [vmem:[%s6939_s1 + $0x648] sm:$0xff]  ;;  %v4331_v20 = vcombine.high %v232_v10, %v236_v12  ;;  %v45_v12 = vld [vmem:[%s6939_s1 + $0x30] sm:$0xff] }
  0x47   :  { %1662 = vmatprep.subr.bf16.mxu0 %v4273_v21  ;;  %1748 = vmatprep.subr.bf16.mxu1 %v4275_v22  ;;  %v244_v21 = vld [vmem:[%s6939_s1 + $0x668] sm:$0xff]  ;;  %v4328_v22 = vcombine.low %v231_v8, %v235_v9 }
  0x48   :  { %1692 = vmatprep.mubr.bf16.mxu0 %v5472_v25  ;;  %1778 = vmatprep.mubr.bf16.mxu1 %v5472_v25  ;;  %v4338_v32 = vcombine.low %v240_v19, %v244_v21 }
  0x4a   :  { %1663 = vmatpush1.bf16.msra.mxu0 %v4272_v28  ;;  %1749 = vmatpush1.bf16.msra.mxu1 %v4274_v29  ;;  %v248_v28 = vld [vmem:[%s6939_s1 + $0x688] sm:$0xff]  ;;  %v4339_v29 = vcombine.high %v240_v19, %v244_v21 }
  0x4b   :  { %1664 = vmatprep.subr.bf16.mxu0 %v4281_v30  ;;  %1750 = vmatprep.subr.bf16.mxu1 %v4283_v34  ;;  %v252_v30 = vld [vmem:[%s6939_s1 + $0x6a8] sm:$0xff]  ;;  %v255_v34 = vld [vmem:[%s6939_s1 + $0x6c0] sm:$0xff] }
  0x4c   :  { %v4346_v40 = vcombine.low %v248_v28, %v252_v30  ;;  %v4353_v41 = vcombine.high %v255_v34, %v259_v35  ;;  %v4352_v47 = vcombine.low %v255_v34, %v259_v35  ;;  %v58_v34 = vld [vmem:[%s6939_s1 + $0x98] sm:$0xff] }
  0x4d   :  { %v62_v35 = vld [vmem:[%s6939_s1 + $0xb8] sm:$0xff] }
  0x4e   :  { %1665 = vmatpush1.bf16.msra.mxu0 %v4280_v36  ;;  %1751 = vmatpush1.bf16.msra.mxu1 %v4282_v37  ;;  %v256_v36 = vld [vmem:[%s6939_s1 + $0x6c8] sm:$0xff]  ;;  %v4347_v37 = vcombine.high %v248_v28, %v252_v30  ;;  %v57_v30 = vld [vmem:[%s6939_s1 + $0x90] sm:$0xff] }
  0x4f   :  { %1666 = vmatprep.subr.bf16.mxu0 %v4289_v38  ;;  %1752 = vmatprep.subr.bf16.mxu1 %v4291_v42  ;;  %v260_v38 = vld [vmem:[%s6939_s1 + $0x6e8] sm:$0xff]  ;;  %v263_v42 = vld [vmem:[%s6939_s1 + $0x700] sm:$0xff] }
  0x50   :  { %v4354_v48 = vcombine.low %v256_v36, %v260_v38  ;;  %v4361_v49 = vcombine.high %v263_v42, %v267_v43  ;;  %v4360_v55 = vcombine.low %v263_v42, %v267_v43  ;;  %v4159_v42 = vcombine.high %v58_v34, %v62_v35  ;;  %v66_v43 = vld [vmem:[%s6939_s1 + $0xd8] sm:$0xff] }
  0x52   :  { %1667 = vmatpush1.bf16.msra.mxu0 %v4288_v44  ;;  %1753 = vmatpush1.bf16.msra.mxu1 %v4290_v45  ;;  %v264_v44 = vld [vmem:[%s6939_s1 + $0x708] sm:$0xff]  ;;  %v4355_v45 = vcombine.high %v256_v36, %v260_v38 }
  0x53   :  { %1668 = vmatprep.subr.bf16.mxu0 %v4297_v46  ;;  %1754 = vmatprep.subr.bf16.mxu1 %v4299_v50  ;;  %v268_v46 = vld [vmem:[%s6939_s1 + $0x728] sm:$0xff]  ;;  %v271_v50 = vld [vmem:[%s6939_s1 + $0x740] sm:$0xff] }
  0x54   :  { %v4362_v56 = vcombine.low %v264_v44, %v268_v46  ;;  %v4369_v57 = vcombine.high %v271_v50, %v275_v51  ;;  %v4368_v0 = vcombine.low %v271_v50, %v275_v51  ;;  %v74_v50 = vld [vmem:[%s6939_s1 + $0x118] sm:$0xff] }
  0x55   :  { %v78_v51 = vld [vmem:[%s6939_s1 + $0x138] sm:$0xff] }
  0x56   :  { %1669 = vmatpush1.bf16.msra.mxu0 %v4296_v52  ;;  %1755 = vmatpush1.bf16.msra.mxu1 %v4298_v53  ;;  %v272_v52 = vld [vmem:[%s6939_s1 + $0x748] sm:$0xff]  ;;  %v4363_v53 = vcombine.high %v264_v44, %v268_v46  ;;  %v70_v44 = vld [vmem:[%s6939_s1 + $0xf8] sm:$0xff]  ;;  %v4158_v46 = vcombine.low %v58_v34, %v62_v35  ;;  %v121_v35 = vld [vmem:[%s6939_s1 + $0x290] sm:$0xff] }
  0x57   :  { %1670 = vmatprep.subr.bf16.mxu0 %v4305_v54  ;;  %1756 = vmatprep.subr.bf16.mxu1 %v4307_v59  ;;  %v276_v54 = vld [vmem:[%s6939_s1 + $0x768] sm:$0xff]  ;;  %v279_v59 = vld [vmem:[%s6939_s1 + $0x780] sm:$0xff] }
  0x58   :  { %v4370_v1 = vcombine.low %v272_v52, %v276_v54  ;;  %v4377_v2 = vcombine.high %v279_v59, %v283_v60  ;;  %v4376_v8 = vcombine.low %v279_v59, %v283_v60  ;;  %v4175_v59 = vcombine.high %v74_v50, %v78_v51  ;;  %v86_v60 = vld [vmem:[%s6939_s1 + $0x178] sm:$0xff] }
  0x5a   :  { %1671 = vmatpush1.bf16.msra.mxu0 %v4304_v61  ;;  %1757 = vmatpush1.bf16.msra.mxu1 %v4306_v62  ;;  %v280_v61 = vld [vmem:[%s6939_s1 + $0x788] sm:$0xff]  ;;  %v4371_v62 = vcombine.high %v272_v52, %v276_v54 }
  0x5b   :  { %1672 = vmatprep.subr.bf16.mxu0 %v4313_v63  ;;  %1758 = vmatprep.subr.bf16.mxu1 %v4315_v3  ;;  %v284_v63 = vld [vmem:[%s6939_s1 + $0x7a8] sm:$0xff]  ;;  %v287_v3 = vld [vmem:[%s6939_s1 + $0x7c0] sm:$0xff] }
  0x5c   :  { %v4378_v9 = vcombine.low %v280_v61, %v284_v63  ;;  %v4385_v10 = vcombine.high %v287_v3, %v291_v4  ;;  %v4384_v19 = vcombine.low %v287_v3, %v291_v4  ;;  %v94_v4 = vld [vmem:[%s6939_s1 + $0x1b8] sm:$0xff] }
  0x5e   :  { %1673 = vmatpush1.bf16.msra.mxu0 %v4312_v5  ;;  %1759 = vmatpush1.bf16.msra.mxu1 %v4314_v6  ;;  %v288_v5 = vld [vmem:[%s6939_s1 + $0x7c8] sm:$0xff]  ;;  %v4379_v6 = vcombine.high %v280_v61, %v284_v63 }
  0x5f   :  { %1674 = vmatprep.subr.bf16.mxu0 %v4321_v7  ;;  %1760 = vmatprep.subr.bf16.mxu1 %v4323_v11  ;;  %v292_v7 = vld [vmem:[%s6939_s1 + $0x7e8] sm:$0xff]  ;;  %v41_v11 = vld [vmem:[%s6939_s1 + $0x10] sm:$0xff] }
  0x60   :  { %v4141_v21 = vcombine.high %v41_v11, %v45_v12 }
  0x62   :  { %1675 = vmatpush1.bf16.msra.mxu0 %v4320_v13  ;;  %1761 = vmatpush1.bf16.msra.mxu1 %v4322_v14  ;;  %v42_v13 = vld [vmem:[%s6939_s1 + $0x18] sm:$0xff]  ;;  %v4387_v14 = vcombine.high %v288_v5, %v292_v7 }
  0x63   :  { %1676 = vmatprep.subr.bf16.mxu0 %v4329_v16  ;;  %1762 = vmatprep.subr.bf16.mxu1 %v4331_v20  ;;  %v29_v16 = vld [vmem:[%s6938_s0 + $0x10] sm:$0xff]  ;;  %v4386_v20 = vcombine.low %v288_v5, %v292_v7  ;;  %v4143_v26 = vcombine.high %v42_v13, %v46_v18 }
  0x64   :  { %v5670_v28 = vpack.c.bf16 %v33_v17, %v29_v16  ;;  %v105_v17 = vld [vmem:[%s6939_s1 + $0x210] sm:$0xff] }
  0x66   :  { %1677 = vmatpush1.bf16.msra.mxu0 %v4328_v22  ;;  %1763 = vmatpush1.bf16.msra.mxu1 %v4330_v23  ;;  %v49_v22 = vld [vmem:[%s6939_s1 + $0x50] sm:$0xff] }
  0x67   :  { %1678 = vmatprep.subr.bf16.mxu0 %v4337_v24  ;;  %1764 = vmatprep.subr.bf16.mxu1 %v4339_v29  ;;  %v53_v23 = vld [vmem:[%s6939_s1 + $0x70] sm:$0xff]  ;;  %v50_v24 = vld [vmem:[%s6939_s1 + $0x58] sm:$0xff]  ;;  %v4140_v29 = vcombine.low %v41_v11, %v45_v12 }
  0x68   :  { %v4151_v36 = vcombine.high %v50_v24, %v54_v27  ;;  %v4150_v38 = vcombine.low %v50_v24, %v54_v27  ;;  %v102_v12 = vld [vmem:[%s6939_s1 + $0x1f8] sm:$0xff]  ;;  %v117_v27 = vld [vmem:[%s6939_s1 + $0x270] sm:$0xff] }
  0x6a   :  { %1679 = vmatpush1.bf16.msra.mxu0 %v4336_v31  ;;  %1765 = vmatpush1.bf16.msra.mxu1 %v4338_v32  ;;  %v61_v31 = vld [vmem:[%s6939_s1 + $0xb0] sm:$0xff]  ;;  %v4142_v32 = vcombine.low %v42_v13, %v46_v18 }
  0x6b   :  { %1680 = vmatprep.subr.bf16.mxu0 %v4345_v33  ;;  %1766 = vmatprep.subr.bf16.mxu1 %v4347_v37  ;;  %v4149_v33 = vcombine.high %v49_v22, %v53_v23  ;;  %v4148_v37 = vcombine.low %v49_v22, %v53_v23  ;;  %v109_v18 = vld [vmem:[%s6939_s1 + $0x230] sm:$0xff] }
  0x6c   :  { %v4205_v24 = vcombine.high %v105_v17, %v109_v18 }
  0x6e   :  { %1681 = vmatpush1.bf16.msra.mxu0 %v4344_v39  ;;  %1767 = vmatpush1.bf16.msra.mxu1 %v4346_v40  ;;  %v4157_v39 = vcombine.high %v57_v30, %v61_v31  ;;  %v65_v40 = vld [vmem:[%s6939_s1 + $0xd0] sm:$0xff] }
  0x6f   :  { %1682 = vmatprep.subr.bf16.mxu0 %v4353_v41  ;;  %1768 = vmatprep.subr.bf16.mxu1 %v4355_v45  ;;  %v69_v41 = vld [vmem:[%s6939_s1 + $0xf0] sm:$0xff]  ;;  %v4156_v45 = vcombine.low %v57_v30, %v61_v31  ;;  %v118_v31 = vld [vmem:[%s6939_s1 + $0x278] sm:$0xff] }
  0x70   :  { %v4164_v52 = vcombine.low %v65_v40, %v69_v41 }
  0x72   :  { %1683 = vmatpush1.bf16.msra.mxu0 %v4352_v47  ;;  %1769 = vmatpush1.bf16.msra.mxu1 %v4354_v48  ;;  %v4165_v47 = vcombine.high %v65_v40, %v69_v41  ;;  %v73_v48 = vld [vmem:[%s6939_s1 + $0x110] sm:$0xff] }
  0x73   :  { %1684 = vmatprep.subr.bf16.mxu0 %v4361_v49  ;;  %1770 = vmatprep.subr.bf16.mxu1 %v4363_v53  ;;  %v77_v49 = vld [vmem:[%s6939_s1 + $0x130] sm:$0xff]  ;;  %v4166_v53 = vcombine.low %v66_v43, %v70_v44 }
  0x74   :  { %v4173_v54 = vcombine.high %v73_v48, %v77_v49  ;;  %v4172_v61 = vcombine.low %v73_v48, %v77_v49  ;;  %v137_v49 = vld [vmem:[%s6939_s1 + $0x310] sm:$0xff] }
  0x76   :  { %1685 = vmatpush1.bf16.msra.mxu0 %v4360_v55  ;;  %1771 = vmatpush1.bf16.msra.mxu1 %v4362_v56  ;;  %v81_v55 = vld [vmem:[%s6939_s1 + $0x150] sm:$0xff] }
  0x77   :  { %1686 = vmatprep.subr.bf16.mxu0 %v4369_v57  ;;  %1772 = vmatprep.subr.bf16.mxu1 %v4371_v62  ;;  %v85_v56 = vld [vmem:[%s6939_s1 + $0x170] sm:$0xff]  ;;  %v82_v57 = vld [vmem:[%s6939_s1 + $0x158] sm:$0xff]  ;;  %v4174_v62 = vcombine.low %v74_v50, %v78_v51 }
  0x78   :  { %v4181_v63 = vcombine.high %v81_v55, %v85_v56  ;;  %v4183_v3 = vcombine.high %v82_v57, %v86_v60  ;;  %v4180_v5 = vcombine.low %v81_v55, %v85_v56  ;;  %v141_v50 = vld [vmem:[%s6939_s1 + $0x330] sm:$0xff] }
  0x79   :  { %v145_v56 = vld [vmem:[%s6939_s1 + $0x350] sm:$0xff] }
  0x7a   :  { %1687 = vmatpush1.bf16.msra.mxu0 %v4368_v0  ;;  %1773 = vmatpush1.bf16.msra.mxu1 %v4370_v1  ;;  %v89_v0 = vld [vmem:[%s6939_s1 + $0x190] sm:$0xff] }
  0x7b   :  { %1688 = vmatprep.subr.bf16.mxu0 %v4377_v2  ;;  %1774 = vmatprep.subr.bf16.mxu1 %v4379_v6  ;;  %v93_v1 = vld [vmem:[%s6939_s1 + $0x1b0] sm:$0xff]  ;;  %v90_v2 = vld [vmem:[%s6939_s1 + $0x198] sm:$0xff]  ;;  %v4182_v6 = vcombine.low %v82_v57, %v86_v60  ;;  %v4237_v60 = vcombine.high %v137_v49, %v141_v50 }
  0x7c   :  { %v4189_v7 = vcombine.high %v89_v0, %v93_v1  ;;  %v4191_v11 = vcombine.high %v90_v2, %v94_v4  ;;  %v4188_v13 = vcombine.low %v89_v0, %v93_v1  ;;  %v149_v57 = vld [vmem:[%s6939_s1 + $0x370] sm:$0xff]  ;;  %v4236_v0 = vcombine.low %v137_v49, %v141_v50 }
  0x7d   :  { %v153_v1 = vld [vmem:[%s6939_s1 + $0x390] sm:$0xff] }
  0x7e   :  { %1689 = vmatpush1.bf16.msra.mxu0 %v4376_v8  ;;  %1775 = vmatpush1.bf16.msra.mxu1 %v4378_v9  ;;  %v97_v8 = vld [vmem:[%s6939_s1 + $0x1d0] sm:$0xff] }
  0x7f   :  { %1690 = vmatprep.subr.bf16.mxu0 %v4385_v10  ;;  %1776 = vmatprep.subr.bf16.mxu1 %v4387_v14  ;;  %v101_v9 = vld [vmem:[%s6939_s1 + $0x1f0] sm:$0xff]  ;;  %v98_v10 = vld [vmem:[%s6939_s1 + $0x1d8] sm:$0xff]  ;;  %v4190_v14 = vcombine.low %v90_v2, %v94_v4  ;;  %v4245_v4 = vcombine.high %v145_v56, %v149_v57 }
  0x80   :  { %v4197_v16 = vcombine.high %v97_v8, %v101_v9  ;;  %v4196_v22 = vcombine.low %v97_v8, %v101_v9  ;;  %v4198_v23 = vcombine.low %v98_v10, %v102_v12  ;;  %v157_v2 = vld [vmem:[%s6939_s1 + $0x3b0] sm:$0xff]  ;;  %v4244_v8 = vcombine.low %v145_v56, %v149_v57 }
  0x81   :  { %v161_v9 = vld [vmem:[%s6939_s1 + $0x3d0] sm:$0xff] }
  0x82   :  { %1691 = vmatpush1.bf16.msra.mxu0 %v4384_v19  ;;  %1777 = vmatpush1.bf16.msra.mxu1 %v4386_v20  ;;  %v106_v19 = vld [vmem:[%s6939_s1 + $0x218] sm:$0xff]  ;;  %v4199_v20 = vcombine.high %v98_v10, %v102_v12  ;;  %v165_v10 = vld [vmem:[%s6939_s1 + $0x3f0] sm:$0xff]  ;;  %v4253_v12 = vcombine.high %v153_v1, %v157_v2 }
  0x83   :  { %1789 = vmatprep.subr.bf16.mxu0 %v4141_v21  ;;  %1875 = vmatprep.subr.bf16.mxu1 %v4143_v26  ;;  %v110_v21 = vld [vmem:[%s6939_s1 + $0x238] sm:$0xff]  ;;  %v113_v26 = vld [vmem:[%s6939_s1 + $0x250] sm:$0xff] }
  0x84   :  { %v4207_v30 = vcombine.high %v106_v19, %v110_v21  ;;  %v4213_v34 = vcombine.high %v113_v26, %v117_v27  ;;  %v4212_v40 = vcombine.low %v113_v26, %v117_v27 }
  0x85   :  { %1693 = vmatmul.mubr.bf16.vlgmr.msra.gmra.mrb[0].mxu0 %v5670_v28  ;;  %1779 = vmatmul.mubr.bf16.vlgmr.msra.gmra.mrb[0].mxu1 %v5670_v28 }
  0x86   :  { %1790 = vmatpush1.bf16.msra.mxu0 %v4140_v29  ;;  %1876 = vmatpush1.bf16.msra.mxu1 %v4142_v32  ;;  %v114_v29 = vld [vmem:[%s6939_s1 + $0x258] sm:$0xff]  ;;  %v4204_v32 = vcombine.low %v105_v17, %v109_v18  ;;  %v4252_v17 = vcombine.low %v153_v1, %v157_v2  ;;  %v169_v18 = vld [vmem:[%s6939_s1 + $0x410] sm:$0xff] }
  0x87   :  { %1791 = vmatprep.subr.bf16.mxu0 %v4149_v33  ;;  %1877 = vmatprep.subr.bf16.mxu1 %v4151_v36  ;;  %v4206_v33 = vcombine.low %v106_v19, %v110_v21  ;;  %v125_v36 = vld [vmem:[%s6939_s1 + $0x2b0] sm:$0xff]  ;;  %v4214_v41 = vcombine.low %v114_v29, %v118_v31  ;;  %v4261_v21 = vcombine.high %v161_v9, %v165_v10 }
  0x88   :  { %1821 = vmatprep.mubr.bf16.mxu0 %v5322_v58  ;;  %1907 = vmatprep.mubr.bf16.mxu1 %v5322_v58  ;;  %v4167_v58 = vcombine.high %v66_v43, %v70_v44  ;;  %v129_v43 = vld [vmem:[%s6939_s1 + $0x2d0] sm:$0xff]  ;;  %v4220_v48 = vcombine.low %v121_v35, %v125_v36 }
  0x89   :  { %v133_v44 = vld [vmem:[%s6939_s1 + $0x2f0] sm:$0xff] }
  0x8a   :  { %1792 = vmatpush1.bf16.msra.mxu0 %v4148_v37  ;;  %1878 = vmatpush1.bf16.msra.mxu1 %v4150_v38  ;;  %v122_v37 = vld [vmem:[%s6939_s1 + $0x298] sm:$0xff]  ;;  %v4215_v38 = vcombine.high %v114_v29, %v118_v31  ;;  %v4229_v51 = vcombine.high %v129_v43, %v133_v44  ;;  %v4228_v55 = vcombine.low %v129_v43, %v133_v44  ;;  %v173_v19 = vld [vmem:[%s6939_s1 + $0x430] sm:$0xff] }
  0x8b   :  { %1793 = vmatprep.subr.bf16.mxu0 %v4157_v39  ;;  %1879 = vmatprep.subr.bf16.mxu1 %v4159_v42  ;;  %v126_v39 = vld [vmem:[%s6939_s1 + $0x2b8] sm:$0xff]  ;;  %v4221_v42 = vcombine.high %v121_v35, %v125_v36 }
  0x8e   :  { %1794 = vmatpush1.bf16.msra.mxu0 %v4156_v45  ;;  %1880 = vmatpush1.bf16.msra.mxu1 %v4158_v46  ;;  %v130_v45 = vld [vmem:[%s6939_s1 + $0x2d8] sm:$0xff]  ;;  %v4223_v46 = vcombine.high %v122_v37, %v126_v39 }
  0x8f   :  { %1795 = vmatprep.subr.bf16.mxu0 %v4165_v47  ;;  %1881 = vmatprep.subr.bf16.mxu1 %v4167_v58  ;;  %v134_v47 = vld [vmem:[%s6939_s1 + $0x2f8] sm:$0xff]  ;;  %v4222_v58 = vcombine.low %v122_v37, %v126_v39 }
  0x92   :  { %1796 = vmatpush1.bf16.msra.mxu0 %v4164_v52  ;;  %1882 = vmatpush1.bf16.msra.mxu1 %v4166_v53  ;;  %v138_v52 = vld [vmem:[%s6939_s1 + $0x318] sm:$0xff] }
  0x93   :  { %1797 = vmatprep.subr.bf16.mxu0 %v4173_v54  ;;  %1883 = vmatprep.subr.bf16.mxu1 %v4175_v59  ;;  %v142_v53 = vld [vmem:[%s6939_s1 + $0x338] sm:$0xff]  ;;  %v4231_v54 = vcombine.high %v130_v45, %v134_v47  ;;  %v4230_v59 = vcombine.low %v130_v45, %v134_v47 }
  0x96   :  { %1798 = vmatpush1.bf16.msra.mxu0 %v4172_v61  ;;  %1884 = vmatpush1.bf16.msra.mxu1 %v4174_v62  ;;  %v146_v61 = vld [vmem:[%s6939_s1 + $0x358] sm:$0xff] }
  0x97   :  { %1799 = vmatprep.subr.bf16.mxu0 %v4181_v63  ;;  %1885 = vmatprep.subr.bf16.mxu1 %v4183_v3  ;;  %v150_v62 = vld [vmem:[%s6939_s1 + $0x378] sm:$0xff]  ;;  %v4239_v63 = vcombine.high %v138_v52, %v142_v53  ;;  %v4238_v3 = vcombine.low %v138_v52, %v142_v53 }
  0x9a   :  { %1800 = vmatpush1.bf16.msra.mxu0 %v4180_v5  ;;  %1886 = vmatpush1.bf16.msra.mxu1 %v4182_v6  ;;  %v154_v5 = vld [vmem:[%s6939_s1 + $0x398] sm:$0xff] }
  0x9b   :  { %1801 = vmatprep.subr.bf16.mxu0 %v4189_v7  ;;  %1887 = vmatprep.subr.bf16.mxu1 %v4191_v11  ;;  %v158_v6 = vld [vmem:[%s6939_s1 + $0x3b8] sm:$0xff]  ;;  %v4247_v7 = vcombine.high %v146_v61, %v150_v62  ;;  %v4246_v11 = vcombine.low %v146_v61, %v150_v62 }
  0x9e   :  { %1802 = vmatpush1.bf16.msra.mxu0 %v4188_v13  ;;  %1888 = vmatpush1.bf16.msra.mxu1 %v4190_v14  ;;  %v162_v13 = vld [vmem:[%s6939_s1 + $0x3d8] sm:$0xff] }
  0x9f   :  { %1803 = vmatprep.subr.bf16.mxu0 %v4197_v16  ;;  %1889 = vmatprep.subr.bf16.mxu1 %v4199_v20  ;;  %v166_v14 = vld [vmem:[%s6939_s1 + $0x3f8] sm:$0xff]  ;;  %v4255_v16 = vcombine.high %v154_v5, %v158_v6  ;;  %v4254_v20 = vcombine.low %v154_v5, %v158_v6 }
  0xa2   :  { %1804 = vmatpush1.bf16.msra.mxu0 %v4196_v22  ;;  %1890 = vmatpush1.bf16.msra.mxu1 %v4198_v23  ;;  %v4263_v22 = vcombine.high %v162_v13, %v166_v14  ;;  %v170_v23 = vld [vmem:[%s6939_s1 + $0x418] sm:$0xff] }
  0xa3   :  { %1805 = vmatprep.subr.bf16.mxu0 %v4205_v24  ;;  %1891 = vmatprep.subr.bf16.mxu1 %v4207_v30  ;;  %v174_v24 = vld [vmem:[%s6939_s1 + $0x438] sm:$0xff] }
  0xa6   :  { %1806 = vmatpush1.bf16.msra.mxu0 %v4204_v32  ;;  %1892 = vmatpush1.bf16.msra.mxu1 %v4206_v33 }
  0xa7   :  { %1807 = vmatprep.subr.bf16.mxu0 %v4213_v34  ;;  %1893 = vmatprep.subr.bf16.mxu1 %v4215_v38 }
  0xaa   :  { %1808 = vmatpush1.bf16.msra.mxu0 %v4212_v40  ;;  %1894 = vmatpush1.bf16.msra.mxu1 %v4214_v41 }
  0xab   :  { %1809 = vmatprep.subr.bf16.mxu0 %v4221_v42  ;;  %1895 = vmatprep.subr.bf16.mxu1 %v4223_v46 }
  0xae   :  { %1810 = vmatpush1.bf16.msra.mxu0 %v4220_v48  ;;  %1896 = vmatpush1.bf16.msra.mxu1 %v4222_v58 }
  0xaf   :  { %1811 = vmatprep.subr.bf16.mxu0 %v4229_v51  ;;  %1897 = vmatprep.subr.bf16.mxu1 %v4231_v54 }
  0xb2   :  { %1812 = vmatpush1.bf16.msra.mxu0 %v4228_v55  ;;  %1898 = vmatpush1.bf16.msra.mxu1 %v4230_v59 }
  0xb3   :  { %1813 = vmatprep.subr.bf16.mxu0 %v4237_v60  ;;  %1899 = vmatprep.subr.bf16.mxu1 %v4239_v63 }
  0xb6   :  { %1814 = vmatpush1.bf16.msra.mxu0 %v4236_v0  ;;  %1900 = vmatpush1.bf16.msra.mxu1 %v4238_v3 }
  0xb7   :  { %1815 = vmatprep.subr.bf16.mxu0 %v4245_v4  ;;  %1901 = vmatprep.subr.bf16.mxu1 %v4247_v7 }
  0xba   :  { %1816 = vmatpush1.bf16.msra.mxu0 %v4244_v8  ;;  %1902 = vmatpush1.bf16.msra.mxu1 %v4246_v11 }
  0xbb   :  { %1817 = vmatprep.subr.bf16.mxu0 %v4253_v12  ;;  %1903 = vmatprep.subr.bf16.mxu1 %v4255_v16 }
  0xbc   :  { %12 = vsyncpa [#allocation3], 0  ;;  %v4260_v26 = vcombine.low %v161_v9, %v165_v10  ;;  %v4262_v27 = vcombine.low %v162_v13, %v166_v14  ;;  %v4269_v29 = vcombine.high %v169_v18, %v173_v19  ;;  %v4271_v30 = vcombine.high %v170_v23, %v174_v24  ;;  %v177_v31 = vld [vmem:[%s6939_s1 + $0x450] sm:$0xff]  ;;  %v178_v33 = vld [vmem:[%s6939_s1 + $0x458] sm:$0xff] }
  0xbd   :  { %v181_v32 = vld [vmem:[%s6939_s1 + $0x470] sm:$0xff]  ;;  %v182_v34 = vld [vmem:[%s6939_s1 + $0x478] sm:$0xff]  ;;  %v4268_v35 = vcombine.low %v169_v18, %v173_v19  ;;  %v4270_v36 = vcombine.low %v170_v23, %v174_v24 }
  0xbe   :  { %1818 = vmatpush1.bf16.msra.mxu0 %v4252_v17  ;;  %1904 = vmatpush1.bf16.msra.mxu1 %v4254_v20  ;;  %v4277_v37 = vcombine.high %v177_v31, %v181_v32  ;;  %v4279_v38 = vcombine.high %v178_v33, %v182_v34  ;;  %v185_v39 = vld [vmem:[%s6939_s1 + $0x490] sm:$0xff]  ;;  %v186_v41 = vld [vmem:[%s6939_s1 + $0x498] sm:$0xff]  ;;  %v4276_v43 = vcombine.low %v177_v31, %v181_v32 }
  0xbf   :  { %1819 = vmatprep.subr.bf16.mxu0 %v4261_v21  ;;  %1905 = vmatprep.subr.bf16.mxu1 %v4263_v22  ;;  %v189_v40 = vld [vmem:[%s6939_s1 + $0x4b0] sm:$0xff]  ;;  %v190_v42 = vld [vmem:[%s6939_s1 + $0x4b8] sm:$0xff]  ;;  %v4278_v44 = vcombine.low %v178_v33, %v182_v34 }
  0xc0   :  { %v4285_v45 = vcombine.high %v185_v39, %v189_v40  ;;  %v4287_v46 = vcombine.high %v186_v41, %v190_v42  ;;  %v193_v47 = vld [vmem:[%s6939_s1 + $0x4d0] sm:$0xff]  ;;  %v198_v49 = vld [vmem:[%s6939_s1 + $0x4f8] sm:$0xff]  ;;  %v4284_v50 = vcombine.low %v185_v39, %v189_v40  ;;  %v4286_v58 = vcombine.low %v186_v41, %v190_v42 }
  0xc1   :  { %v197_v48 = vld [vmem:[%s6939_s1 + $0x4f0] sm:$0xff]  ;;  %v206_v55 = vld [vmem:[%s6939_s1 + $0x538] sm:$0xff] }
  0xc2   :  { %1820 = vmatpush1.bf16.msra.mxu0 %v4260_v26  ;;  %1906 = vmatpush1.bf16.msra.mxu1 %v4262_v27  ;;  %v4293_v51 = vcombine.high %v193_v47, %v197_v48  ;;  %v201_v53 = vld [vmem:[%s6939_s1 + $0x510] sm:$0xff]  ;;  %v4292_v56 = vcombine.low %v193_v47, %v197_v48  ;;  %v210_v63 = vld [vmem:[%s6939_s1 + $0x558] sm:$0xff] }
  0xc3   :  { %1832 = vmatprep.subr.bf16.mxu0 %v4269_v29  ;;  %1918 = vmatprep.subr.bf16.mxu1 %v4271_v30  ;;  %v205_v54 = vld [vmem:[%s6939_s1 + $0x530] sm:$0xff]  ;;  %v214_v0 = vld [vmem:[%s6939_s1 + $0x578] sm:$0xff] }
  0xc4   :  { %v4301_v59 = vcombine.high %v201_v53, %v205_v54  ;;  %v209_v61 = vld [vmem:[%s6939_s1 + $0x550] sm:$0xff]  ;;  %v4300_v1 = vcombine.low %v201_v53, %v205_v54  ;;  %v4311_v4 = vcombine.high %v210_v63, %v214_v0  ;;  %v218_v7 = vld [vmem:[%s6939_s1 + $0x598] sm:$0xff]  ;;  %v4310_v10 = vcombine.low %v210_v63, %v214_v0 }
  0xc5   :  { %1822 = vmatmul.mubr.bf16.vlgmr.msra.gmra.mrb[4].mxu0 %v5455_v15  ;;  %1908 = vmatmul.mubr.bf16.vlgmr.msra.gmra.mrb[4].mxu1 %v5455_v15  ;;  %v194_v15 = vld [vmem:[%s6939_s1 + $0x4d8] sm:$0xff]  ;;  %v213_v62 = vld [vmem:[%s6939_s1 + $0x570] sm:$0xff] }
  0xc6   :  { %1833 = vmatpush1.bf16.msra.mxu0 %v4268_v35  ;;  %1919 = vmatpush1.bf16.msra.mxu1 %v4270_v36  ;;  %v4295_v52 = vcombine.high %v194_v15, %v198_v49  ;;  %v4294_v57 = vcombine.low %v194_v15, %v198_v49  ;;  %v4309_v3 = vcombine.high %v209_v61, %v213_v62  ;;  %v217_v5 = vld [vmem:[%s6939_s1 + $0x590] sm:$0xff]  ;;  %v222_v8 = vld [vmem:[%s6939_s1 + $0x5b8] sm:$0xff] }
  0xc7   :  { %1834 = vmatprep.subr.bf16.mxu0 %v4277_v37  ;;  %1920 = vmatprep.subr.bf16.mxu1 %v4279_v38  ;;  %v221_v6 = vld [vmem:[%s6939_s1 + $0x5b0] sm:$0xff]  ;;  %v4308_v9 = vcombine.low %v209_v61, %v213_v62  ;;  %v4319_v12 = vcombine.high %v218_v7, %v222_v8  ;;  %v226_v16 = vld [vmem:[%s6939_s1 + $0x5d8] sm:$0xff]  ;;  %v4318_v19 = vcombine.low %v218_v7, %v222_v8 }
  0xc8   :  { %1864 = vmatprep.mubr.bf16.mxu0 %v5472_v25  ;;  %1950 = vmatprep.mubr.bf16.mxu1 %v5472_v25  ;;  %v202_v25 = vld [vmem:[%s6939_s1 + $0x518] sm:$0xff]  ;;  %v4317_v11 = vcombine.high %v217_v5, %v221_v6  ;;  %v225_v13 = vld [vmem:[%s6939_s1 + $0x5d0] sm:$0xff]  ;;  %v4316_v18 = vcombine.low %v217_v5, %v221_v6 }
  0xc9   :  { %v4303_v60 = vcombine.high %v202_v25, %v206_v55  ;;  %v4302_v2 = vcombine.low %v202_v25, %v206_v55  ;;  %v229_v14 = vld [vmem:[%s6939_s1 + $0x5f0] sm:$0xff]  ;;  %v230_v17 = vld [vmem:[%s6939_s1 + $0x5f8] sm:$0xff] }
  0xca   :  { %1835 = vmatpush1.bf16.msra.mxu0 %v4276_v43  ;;  %1921 = vmatpush1.bf16.msra.mxu1 %v4278_v44  ;;  %v4325_v20 = vcombine.high %v225_v13, %v229_v14  ;;  %v4327_v21 = vcombine.high %v226_v16, %v230_v17  ;;  %v233_v22 = vld [vmem:[%s6939_s1 + $0x610] sm:$0xff]  ;;  %v234_v24 = vld [vmem:[%s6939_s1 + $0x618] sm:$0xff]  ;;  %v4324_v27 = vcombine.low %v225_v13, %v229_v14 }
  0xcb   :  { %1836 = vmatprep.subr.bf16.mxu0 %v4285_v45  ;;  %1922 = vmatprep.subr.bf16.mxu1 %v4287_v46  ;;  %v237_v23 = vld [vmem:[%s6939_s1 + $0x630] sm:$0xff]  ;;  %v238_v26 = vld [vmem:[%s6939_s1 + $0x638] sm:$0xff]  ;;  %v4326_v29 = vcombine.low %v226_v16, %v230_v17 }
  0xcc   :  { %v4333_v30 = vcombine.high %v233_v22, %v237_v23  ;;  %v4335_v31 = vcombine.high %v234_v24, %v238_v26  ;;  %v241_v32 = vld [vmem:[%s6939_s1 + $0x650] sm:$0xff]  ;;  %v242_v34 = vld [vmem:[%s6939_s1 + $0x658] sm:$0xff]  ;;  %v4332_v36 = vcombine.low %v233_v22, %v237_v23  ;;  %v4334_v37 = vcombine.low %v234_v24, %v238_v26 }
  0xcd   :  { %v245_v33 = vld [vmem:[%s6939_s1 + $0x670] sm:$0xff]  ;;  %v246_v35 = vld [vmem:[%s6939_s1 + $0x678] sm:$0xff] }
  0xce   :  { %1837 = vmatpush1.bf16.msra.mxu0 %v4284_v50  ;;  %1923 = vmatpush1.bf16.msra.mxu1 %v4286_v58  ;;  %v4341_v38 = vcombine.high %v241_v32, %v245_v33  ;;  %v4343_v39 = vcombine.high %v242_v34, %v246_v35  ;;  %v249_v40 = vld [vmem:[%s6939_s1 + $0x690] sm:$0xff]  ;;  %v250_v42 = vld [vmem:[%s6939_s1 + $0x698] sm:$0xff]  ;;  %v4340_v44 = vcombine.low %v241_v32, %v245_v33 }
  0xcf   :  { %1838 = vmatprep.subr.bf16.mxu0 %v4293_v51  ;;  %1924 = vmatprep.subr.bf16.mxu1 %v4295_v52  ;;  %v253_v41 = vld [vmem:[%s6939_s1 + $0x6b0] sm:$0xff]  ;;  %v254_v43 = vld [vmem:[%s6939_s1 + $0x6b8] sm:$0xff]  ;;  %v4342_v45 = vcombine.low %v242_v34, %v246_v35 }
  0xd0   :  { %v4349_v46 = vcombine.high %v249_v40, %v253_v41  ;;  %v4351_v47 = vcombine.high %v250_v42, %v254_v43  ;;  %v257_v48 = vld [vmem:[%s6939_s1 + $0x6d0] sm:$0xff]  ;;  %v258_v49 = vld [vmem:[%s6939_s1 + $0x6d8] sm:$0xff]  ;;  %v4348_v58 = vcombine.low %v249_v40, %v253_v41  ;;  %v4350_v51 = vcombine.low %v250_v42, %v254_v43 }
  0xd1   :  { %v261_v15 = vld [vmem:[%s6939_s1 + $0x6f0] sm:$0xff]  ;;  %v262_v50 = vld [vmem:[%s6939_s1 + $0x6f8] sm:$0xff] }
  0xd2   :  { %1839 = vmatpush1.bf16.msra.mxu0 %v4292_v56  ;;  %1925 = vmatpush1.bf16.msra.mxu1 %v4294_v57  ;;  %v4357_v52 = vcombine.high %v257_v48, %v261_v15  ;;  %v4359_v53 = vcombine.high %v258_v49, %v262_v50  ;;  %v265_v54 = vld [vmem:[%s6939_s1 + $0x710] sm:$0xff]  ;;  %v266_v55 = vld [vmem:[%s6939_s1 + $0x718] sm:$0xff]  ;;  %v4356_v57 = vcombine.low %v257_v48, %v261_v15 }
  0xd3   :  { %1840 = vmatprep.subr.bf16.mxu0 %v4301_v59  ;;  %1926 = vmatprep.subr.bf16.mxu1 %v4303_v60  ;;  %v269_v25 = vld [vmem:[%s6939_s1 + $0x730] sm:$0xff]  ;;  %v270_v56 = vld [vmem:[%s6939_s1 + $0x738] sm:$0xff]  ;;  %v4358_v59 = vcombine.low %v258_v49, %v262_v50 }
  0xd4   :  { %v4365_v60 = vcombine.high %v265_v54, %v269_v25  ;;  %v4367_v61 = vcombine.high %v266_v55, %v270_v56  ;;  %v273_v62 = vld [vmem:[%s6939_s1 + $0x750] sm:$0xff]  ;;  %v274_v0 = vld [vmem:[%s6939_s1 + $0x758] sm:$0xff] }
  0xd5   :  { %v277_v63 = vld [vmem:[%s6939_s1 + $0x770] sm:$0xff]  ;;  %v282_v8 = vld [vmem:[%s6939_s1 + $0x798] sm:$0xff] }
  0xd6   :  { %1841 = vmatpush1.bf16.msra.mxu0 %v4300_v1  ;;  %1927 = vmatpush1.bf16.msra.mxu1 %v4302_v2  ;;  %v278_v1 = vld [vmem:[%s6939_s1 + $0x778] sm:$0xff]  ;;  %v4364_v2 = vcombine.low %v265_v54, %v269_v25  ;;  %v281_v6 = vld [vmem:[%s6939_s1 + $0x790] sm:$0xff] }
  0xd7   :  { %1842 = vmatprep.subr.bf16.mxu0 %v4309_v3  ;;  %1928 = vmatprep.subr.bf16.mxu1 %v4311_v4  ;;  %v4366_v3 = vcombine.low %v266_v55, %v270_v56  ;;  %v4373_v4 = vcombine.high %v273_v62, %v277_v63  ;;  %v4375_v5 = vcombine.high %v274_v0, %v278_v1  ;;  %v285_v7 = vld [vmem:[%s6939_s1 + $0x7b0] sm:$0xff]  ;;  %v290_v17 = vld [vmem:[%s6939_s1 + $0x7d8] sm:$0xff] }
  0xd8   :  { %v289_v14 = vld [vmem:[%s6939_s1 + $0x7d0] sm:$0xff]  ;;  %v4726_v32 = vld [vmem:[%s6941_s3 + $0x2c] ss:$16 sps:$4 sm:$0xff]   ;;  %v4724_v34 = vld [vmem:[%s6941_s3 + $0x28] ss:$16 sps:$4 sm:$0xff]  }
  0xd9   :  { %v293_v16 = vld [vmem:[%s6939_s1 + $0x7f0] sm:$0xff]  ;;  %v4736_v41 = vld [vmem:[%s6941_s3 + $0x68] ss:$16 sps:$4 sm:$0xff]   ;;  %v4744_v43 = vld [vmem:[%s6941_s3 + $0x8c] ss:$16 sps:$4 sm:$0xff]  }
  0xda   :  { %1843 = vmatpush1.bf16.msra.mxu0 %v4308_v9  ;;  %1929 = vmatpush1.bf16.msra.mxu1 %v4310_v10  ;;  %v286_v9 = vld [vmem:[%s6939_s1 + $0x7b8] sm:$0xff]  ;;  %v4372_v10 = vcombine.low %v273_v62, %v277_v63  ;;  %v4388_v23 = vcombine.low %v289_v14, %v293_v16  ;;  %v4717_v26 = vld [vmem:[%s6941_s3 + $0x4] ss:$16 sps:$4 sm:$0xff]   ;;  %v4721_v33 = vld [vmem:[%s6941_s3 + $0x20] ss:$16 sps:$4 sm:$0xff]  }
  0xdb   :  { %1844 = vmatprep.subr.bf16.mxu0 %v4317_v11  ;;  %1930 = vmatprep.subr.bf16.mxu1 %v4319_v12  ;;  %v4374_v11 = vcombine.low %v274_v0, %v278_v1  ;;  %v4381_v12 = vcombine.high %v281_v6, %v285_v7  ;;  %v4383_v13 = vcombine.high %v282_v8, %v286_v9  ;;  %v4729_v35 = vld [vmem:[%s6941_s3 + $0x44] ss:$16 sps:$4 sm:$0xff]   ;;  %v4733_v40 = vld [vmem:[%s6941_s3 + $0x60] ss:$16 sps:$4 sm:$0xff]   ;;  %v4748_v15 = vld [vmem:[%s6941_s3 + $0xa8] ss:$16 sps:$4 sm:$0xff]  }
  0xdc   :  { %v4741_v42 = vld [vmem:[%s6941_s3 + $0x84] ss:$16 sps:$4 sm:$0xff]   ;;  %v4745_v48 = vld [vmem:[%s6941_s3 + $0xa0] ss:$16 sps:$4 sm:$0xff]   ;;  %v4756_v50 = vld [vmem:[%s6941_s3 + $0xcc] ss:$16 sps:$4 sm:$0xff]  }
  0xdd   :  { %v4753_v49 = vld [vmem:[%s6941_s3 + $0xc4] ss:$16 sps:$4 sm:$0xff]   ;;  %v4757_v54 = vld [vmem:[%s6941_s3 + $0xe0] ss:$16 sps:$4 sm:$0xff]   ;;  %v4760_v25 = vld [vmem:[%s6941_s3 + $0xe8] ss:$16 sps:$4 sm:$0xff]  }
  0xde   :  { %1845 = vmatpush1.bf16.msra.mxu0 %v4316_v18  ;;  %1931 = vmatpush1.bf16.msra.mxu1 %v4318_v19  ;;  %v294_v18 = vld [vmem:[%s6939_s1 + $0x7f8] sm:$0xff]  ;;  %v4380_v19 = vcombine.low %v281_v6, %v285_v7  ;;  %v4765_v55 = vld [vmem:[%s6941_s3 + $0x104] ss:$16 sps:$4 sm:$0xff]   ;;  %v4769_v62 = vld [vmem:[%s6941_s3 + $0x120] ss:$16 sps:$4 sm:$0xff]  }
  0xdf   :  { %1846 = vmatprep.subr.bf16.mxu0 %v4325_v20  ;;  %1932 = vmatprep.subr.bf16.mxu1 %v4327_v21  ;;  %v4382_v20 = vcombine.low %v282_v8, %v286_v9  ;;  %v4389_v21 = vcombine.high %v289_v14, %v293_v16  ;;  %v4391_v22 = vcombine.high %v290_v17, %v294_v18  ;;  %v4768_v56 = vld [vmem:[%s6941_s3 + $0x10c] ss:$16 sps:$4 sm:$0xff]   ;;  %v4772_v63 = vld [vmem:[%s6941_s3 + $0x128] ss:$16 sps:$4 sm:$0xff]   ;;  %v4777_v0 = vld [vmem:[%s6941_s3 + $0x144] ss:$16 sps:$4 sm:$0xff]  }
  0xe0   :  { %v4390_v24 = vcombine.low %v290_v17, %v294_v18  ;;  %v4780_v1 = vld [vmem:[%s6941_s3 + $0x14c] ss:$16 sps:$4 sm:$0xff]   ;;  %v4781_v6 = vld [vmem:[%s6941_s3 + $0x160] ss:$16 sps:$4 sm:$0xff]   ;;  %v4784_v7 = vld [vmem:[%s6941_s3 + $0x168] ss:$16 sps:$4 sm:$0xff]  }
  0xe1   :  { %v4789_v8 = vld [vmem:[%s6941_s3 + $0x184] ss:$16 sps:$4 sm:$0xff]   ;;  %v4792_v9 = vld [vmem:[%s6941_s3 + $0x18c] ss:$16 sps:$4 sm:$0xff]   ;;  %v4793_v14 = vld [vmem:[%s6941_s3 + $0x1a0] ss:$16 sps:$4 sm:$0xff]  }
  0xe2   :  { %1847 = vmatpush1.bf16.msra.mxu0 %v4324_v27  ;;  %1933 = vmatpush1.bf16.msra.mxu1 %v4326_v29  ;;  %v4720_v27 = vld [vmem:[%s6941_s3 + $0xc] ss:$16 sps:$4 sm:$0xff]   ;;  %v4715_v29 = vld [vmem:[%s6941_s3] ss:$16 sps:$4 sm:$0xff]   ;;  %v4796_v16 = vld [vmem:[%s6941_s3 + $0x1a8] ss:$16 sps:$4 sm:$0xff]  }
  0xe3   :  { %1848 = vmatprep.subr.bf16.mxu0 %v4333_v30  ;;  %1934 = vmatprep.subr.bf16.mxu1 %v4335_v31  ;;  %v4718_v30 = vld [vmem:[%s6941_s3 + $0x8] ss:$16 sps:$4 sm:$0xff]   ;;  %v4723_v31 = vld [vmem:[%s6941_s3 + $0x24] ss:$16 sps:$4 sm:$0xff]   ;;  %v4804_v18 = vld [vmem:[%s6941_s3 + $0x1cc] ss:$16 sps:$4 sm:$0xff]  }
  0xe4   :  { %v4801_v17 = vld [vmem:[%s6941_s3 + $0x1c4] ss:$16 sps:$4 sm:$0xff]  }
  0xe6   :  { %1849 = vmatpush1.bf16.msra.mxu0 %v4332_v36  ;;  %1935 = vmatpush1.bf16.msra.mxu1 %v4334_v37  ;;  %v4727_v36 = vld [vmem:[%s6941_s3 + $0x40] ss:$16 sps:$4 sm:$0xff]   ;;  %v4730_v37 = vld [vmem:[%s6941_s3 + $0x48] ss:$16 sps:$4 sm:$0xff]  }
  0xe7   :  { %1850 = vmatprep.subr.bf16.mxu0 %v4341_v38  ;;  %1936 = vmatprep.subr.bf16.mxu1 %v4343_v39  ;;  %v4735_v38 = vld [vmem:[%s6941_s3 + $0x64] ss:$16 sps:$4 sm:$0xff]   ;;  %v4738_v39 = vld [vmem:[%s6941_s3 + $0x6c] ss:$16 sps:$4 sm:$0xff]  }
  0xea   :  { %1851 = vmatpush1.bf16.msra.mxu0 %v4340_v44  ;;  %1937 = vmatpush1.bf16.msra.mxu1 %v4342_v45  ;;  %v4739_v44 = vld [vmem:[%s6941_s3 + $0x80] ss:$16 sps:$4 sm:$0xff]   ;;  %v4742_v45 = vld [vmem:[%s6941_s3 + $0x88] ss:$16 sps:$4 sm:$0xff]  }
  0xeb   :  { %1852 = vmatprep.subr.bf16.mxu0 %v4349_v46  ;;  %1938 = vmatprep.subr.bf16.mxu1 %v4351_v47  ;;  %v4747_v46 = vld [vmem:[%s6941_s3 + $0xa4] ss:$16 sps:$4 sm:$0xff]   ;;  %v4750_v47 = vld [vmem:[%s6941_s3 + $0xac] ss:$16 sps:$4 sm:$0xff]  }
  0xee   :  { %1853 = vmatpush1.bf16.msra.mxu0 %v4348_v58  ;;  %1939 = vmatpush1.bf16.msra.mxu1 %v4350_v51  ;;  %v4751_v58 = vld [vmem:[%s6941_s3 + $0xc0] ss:$16 sps:$4 sm:$0xff]   ;;  %v4754_v51 = vld [vmem:[%s6941_s3 + $0xc8] ss:$16 sps:$4 sm:$0xff]  }
  0xef   :  { %1854 = vmatprep.subr.bf16.mxu0 %v4357_v52  ;;  %1940 = vmatprep.subr.bf16.mxu1 %v4359_v53  ;;  %v4759_v52 = vld [vmem:[%s6941_s3 + $0xe4] ss:$16 sps:$4 sm:$0xff]   ;;  %v4762_v53 = vld [vmem:[%s6941_s3 + $0xec] ss:$16 sps:$4 sm:$0xff]  }
  0xf2   :  { %1855 = vmatpush1.bf16.msra.mxu0 %v4356_v57  ;;  %1941 = vmatpush1.bf16.msra.mxu1 %v4358_v59  ;;  %v4763_v57 = vld [vmem:[%s6941_s3 + $0x100] ss:$16 sps:$4 sm:$0xff]   ;;  %v4766_v59 = vld [vmem:[%s6941_s3 + $0x108] ss:$16 sps:$4 sm:$0xff]  }
  0xf3   :  { %1856 = vmatprep.subr.bf16.mxu0 %v4365_v60  ;;  %1942 = vmatprep.subr.bf16.mxu1 %v4367_v61  ;;  %v4771_v60 = vld [vmem:[%s6941_s3 + $0x124] ss:$16 sps:$4 sm:$0xff]   ;;  %v4774_v61 = vld [vmem:[%s6941_s3 + $0x12c] ss:$16 sps:$4 sm:$0xff]  }
  0xf6   :  { %1857 = vmatpush1.bf16.msra.mxu0 %v4364_v2  ;;  %1943 = vmatpush1.bf16.msra.mxu1 %v4366_v3  ;;  %v4775_v2 = vld [vmem:[%s6941_s3 + $0x140] ss:$16 sps:$4 sm:$0xff]   ;;  %v4778_v3 = vld [vmem:[%s6941_s3 + $0x148] ss:$16 sps:$4 sm:$0xff]  }
  0xf7   :  { %1858 = vmatprep.subr.bf16.mxu0 %v4373_v4  ;;  %1944 = vmatprep.subr.bf16.mxu1 %v4375_v5  ;;  %v4783_v4 = vld [vmem:[%s6941_s3 + $0x164] ss:$16 sps:$4 sm:$0xff]   ;;  %v4786_v5 = vld [vmem:[%s6941_s3 + $0x16c] ss:$16 sps:$4 sm:$0xff]  }
  0xfa   :  { %1859 = vmatpush1.bf16.msra.mxu0 %v4372_v10  ;;  %1945 = vmatpush1.bf16.msra.mxu1 %v4374_v11  ;;  %v4787_v10 = vld [vmem:[%s6941_s3 + $0x180] ss:$16 sps:$4 sm:$0xff]   ;;  %v4790_v11 = vld [vmem:[%s6941_s3 + $0x188] ss:$16 sps:$4 sm:$0xff]  }
  0xfb   :  { %1860 = vmatprep.subr.bf16.mxu0 %v4381_v12  ;;  %1946 = vmatprep.subr.bf16.mxu1 %v4383_v13  ;;  %v4795_v12 = vld [vmem:[%s6941_s3 + $0x1a4] ss:$16 sps:$4 sm:$0xff]   ;;  %v4798_v13 = vld [vmem:[%s6941_s3 + $0x1ac] ss:$16 sps:$4 sm:$0xff]  }
  0xfe   :  { %1861 = vmatpush1.bf16.msra.mxu0 %v4380_v19  ;;  %1947 = vmatpush1.bf16.msra.mxu1 %v4382_v20  ;;  %v4799_v19 = vld [vmem:[%s6941_s3 + $0x1c0] ss:$16 sps:$4 sm:$0xff]   ;;  %v4802_v20 = vld [vmem:[%s6941_s3 + $0x1c8] ss:$16 sps:$4 sm:$0xff]  }
  0xff   :  { %1862 = vmatprep.subr.bf16.mxu0 %v4389_v21  ;;  %1948 = vmatprep.subr.bf16.mxu1 %v4391_v22  ;;  %v4807_v21 = vld [vmem:[%s6941_s3 + $0x1e4] ss:$16 sps:$4 sm:$0xff]   ;;  %v4810_v22 = vld [vmem:[%s6941_s3 + $0x1ec] ss:$16 sps:$4 sm:$0xff]  }
 0x102   :  { %1863 = vmatpush1.bf16.msra.mxu0 %v4388_v23  ;;  %1949 = vmatpush1.bf16.msra.mxu1 %v4390_v24  ;;  %v4805_v23 = vld [vmem:[%s6941_s3 + $0x1e0] ss:$16 sps:$4 sm:$0xff]   ;;  %v4808_v24 = vld [vmem:[%s6941_s3 + $0x1e8] ss:$16 sps:$4 sm:$0xff]  }
 0x103   :  { %3607 = vmatprep.subr.bf16.mxu0 %v4717_v26  ;;  %3779 = vmatprep.subr.bf16.mxu1 %v4720_v27  ;;  %v4813_v26 = vld [vmem:[%s6941_s3 + $0x204] ss:$16 sps:$4 sm:$0xff]   ;;  %v4816_v27 = vld [vmem:[%s6941_s3 + $0x20c] ss:$16 sps:$4 sm:$0xff]  }
 0x105   :  { %1865 = vmatmul.mubr.bf16.vlgmr.msra.gmra.mrb[4].mxu0 %v5670_v28  ;;  %1951 = vmatmul.mubr.bf16.vlgmr.msra.gmra.mrb[4].mxu1 %v5670_v28  ;;  %v4732_v28 = vld [vmem:[%s6941_s3 + $0x4c] ss:$16 sps:$4 sm:$0xff]  }
 0x106   :  { %3608 = vmatpush1.bf16.msra.mxu0 %v4715_v29  ;;  %3780 = vmatpush1.bf16.msra.mxu1 %v4718_v30  ;;  %v297_v29 = vlaneseq }
 0x107   :  { %3609 = vmatprep.subr.bf16.mxu0 %v4723_v31  ;;  %3781 = vmatprep.subr.bf16.mxu1 %v4726_v32  ;;  %v6248_v32 = vld [vmem:[%s6940_s2] sm:$0xff] }
 0x108   :  { %v6240_v30 = vshrl.u32 %v297_v29, 7 }
 0x10a   :  { %3610 = vmatpush1.bf16.msra.mxu0 %v4721_v33  ;;  %3782 = vmatpush1.bf16.msra.mxu1 %v4724_v34  ;;  %v6243_v31 = vsub.s32 0, %v6240_v30  ;;  %v6251_v33 = vsub.s32 2, %v6240_v30  ;;  %v6254_v34 = vsub.s32 1, %v6240_v30 }
 0x10b   :  { %3611 = vmatprep.subr.bf16.mxu0 %v4729_v35  ;;  %3783 = vmatprep.subr.bf16.mxu1 %v4732_v28  ;;  %v6257_v35 = vsub.s32 3, %v6240_v30 }
 0x10c   :  { %v300_v28 = vrot.slane %v6248_v32, %v6243_v31 }
 0x10e   :  { %3612 = vmatpush1.bf16.msra.mxu0 %v4727_v36  ;;  %3784 = vmatpush1.bf16.msra.mxu1 %v4730_v37  ;;  %v308_v36 = vrot.slane %v6248_v32, %v6251_v33  ;;  %v304_v37 = vrot.slane %v6248_v32, %v6254_v34 }
 0x10f   :  { %3613 = vmatprep.subr.bf16.mxu0 %v4735_v38  ;;  %3785 = vmatprep.subr.bf16.mxu1 %v4738_v39  ;;  %v312_v38 = vrot.slane %v6248_v32, %v6257_v35 }
 0x112   :  { %3614 = vmatpush1.bf16.msra.mxu0 %v4733_v40  ;;  %3786 = vmatpush1.bf16.msra.mxu1 %v4736_v41 }
 0x113   :  { %3615 = vmatprep.subr.bf16.mxu0 %v4741_v42  ;;  %3787 = vmatprep.subr.bf16.mxu1 %v4744_v43 }
 0x116   :  { %3616 = vmatpush1.bf16.msra.mxu0 %v4739_v44  ;;  %3788 = vmatpush1.bf16.msra.mxu1 %v4742_v45 }
 0x117   :  { %3617 = vmatprep.subr.bf16.mxu0 %v4747_v46  ;;  %3789 = vmatprep.subr.bf16.mxu1 %v4750_v47 }
 0x11a   :  { %3618 = vmatpush1.bf16.msra.mxu0 %v4745_v48  ;;  %3790 = vmatpush1.bf16.msra.mxu1 %v4748_v15 }
 0x11b   :  { %3619 = vmatprep.subr.bf16.mxu0 %v4753_v49  ;;  %3791 = vmatprep.subr.bf16.mxu1 %v4756_v50 }
 0x11e   :  { %3620 = vmatpush1.bf16.msra.mxu0 %v4751_v58  ;;  %3792 = vmatpush1.bf16.msra.mxu1 %v4754_v51 }
 0x11f   :  { %3621 = vmatprep.subr.bf16.mxu0 %v4759_v52  ;;  %3793 = vmatprep.subr.bf16.mxu1 %v4762_v53 }
 0x122   :  { %3622 = vmatpush1.bf16.msra.mxu0 %v4757_v54  ;;  %3794 = vmatpush1.bf16.msra.mxu1 %v4760_v25 }
 0x123   :  { %3623 = vmatprep.subr.bf16.mxu0 %v4765_v55  ;;  %3795 = vmatprep.subr.bf16.mxu1 %v4768_v56 }
 0x126   :  { %3624 = vmatpush1.bf16.msra.mxu0 %v4763_v57  ;;  %3796 = vmatpush1.bf16.msra.mxu1 %v4766_v59 }
 0x127   :  { %3625 = vmatprep.subr.bf16.mxu0 %v4771_v60  ;;  %3797 = vmatprep.subr.bf16.mxu1 %v4774_v61 }
 0x12a   :  { %3626 = vmatpush1.bf16.msra.mxu0 %v4769_v62  ;;  %3798 = vmatpush1.bf16.msra.mxu1 %v4772_v63 }
 0x12b   :  { %3627 = vmatprep.subr.bf16.mxu0 %v4777_v0  ;;  %3799 = vmatprep.subr.bf16.mxu1 %v4780_v1 }
 0x12e   :  { %3628 = vmatpush1.bf16.msra.mxu0 %v4775_v2  ;;  %3800 = vmatpush1.bf16.msra.mxu1 %v4778_v3 }
 0x12f   :  { %3629 = vmatprep.subr.bf16.mxu0 %v4783_v4  ;;  %3801 = vmatprep.subr.bf16.mxu1 %v4786_v5 }
 0x132   :  { %3630 = vmatpush1.bf16.msra.mxu0 %v4781_v6  ;;  %3802 = vmatpush1.bf16.msra.mxu1 %v4784_v7 }
 0x133   :  { %3631 = vmatprep.subr.bf16.mxu0 %v4789_v8  ;;  %3803 = vmatprep.subr.bf16.mxu1 %v4792_v9 }
 0x136   :  { %3632 = vmatpush1.bf16.msra.mxu0 %v4787_v10  ;;  %3804 = vmatpush1.bf16.msra.mxu1 %v4790_v11 }
 0x137   :  { %3633 = vmatprep.subr.bf16.mxu0 %v4795_v12  ;;  %3805 = vmatprep.subr.bf16.mxu1 %v4798_v13 }
 0x13a   :  { %3634 = vmatpush1.bf16.msra.mxu0 %v4793_v14  ;;  %3806 = vmatpush1.bf16.msra.mxu1 %v4796_v16 }
 0x13b   :  { %3635 = vmatprep.subr.bf16.mxu0 %v4801_v17  ;;  %3807 = vmatprep.subr.bf16.mxu1 %v4804_v18 }
 0x13e   :  { %3636 = vmatpush1.bf16.msra.mxu0 %v4799_v19  ;;  %3808 = vmatpush1.bf16.msra.mxu1 %v4802_v20 }
 0x13f   :  { %3637 = vmatprep.subr.bf16.mxu0 %v4807_v21  ;;  %3809 = vmatprep.subr.bf16.mxu1 %v4810_v22 }
 0x142   :  { %3638 = vmatpush1.bf16.msra.mxu0 %v4805_v23  ;;  %3810 = vmatpush1.bf16.msra.mxu1 %v4808_v24 }
 0x143   :  { %3650 = vmatprep.subr.bf16.mxu0 %v4813_v26  ;;  %3822 = vmatprep.subr.bf16.mxu1 %v4816_v27 }
 0x158   :  { %v1694_v39 = vpop.f32.mrb[0].mxu0  ;;  %v1780_v41 = vpop.f32.mrb[0].mxu1 }
 0x159   :  { %v4648_v40 = vadd.f32 %v1694_v39, %v300_v28  ;;  %v1696_v42 = vpop.f32.mrb[1].mxu0  ;;  %v4652_v43 = vadd.f32 %v1780_v41, %v308_v36  ;;  %v1782_v45 = vpop.f32.mrb[1].mxu1  ;;  %v4814_v41 = vld [vmem:[%s6941_s3 + $0x208] ss:$16 sps:$4 sm:$0xff]  }
 0x15a   :  { %v4649_v44 = vadd.f32 %v1696_v42, %v304_v37  ;;  %v1698_v46 = vpop.f32.mrb[2].mxu0  ;;  %v4653_v48 = vadd.f32 %v1782_v45, %v312_v38  ;;  %v1784_v49 = vpop.f32.mrb[2].mxu1  ;;  %v4817_v45 = vld [vmem:[%s6941_s3 + $0x220] ss:$16 sps:$4 sm:$0xff]  }
 0x15b   :  { %v1977_v47 = vmul.f32 0.70710677, %v4648_v40  ;;  %v4650_v15 = vadd.f32 %v1698_v46, %v300_v28  ;;  %v1700_v50 = vpop.f32.mrb[3].mxu0  ;;  %v1979_v58 = vmul.f32 0.70710677, %v4652_v43  ;;  %v1786_v53 = vpop.f32.mrb[3].mxu1  ;;  %v4654_v25 = vadd.f32 %v1784_v49, %v308_v36 }
 0x15c   :  { %v1978_v51 = vmul.f32 0.70710677, %v4649_v44  ;;  %v1980_v52 = vmul.f32 0.70710677, %v4653_v48  ;;  %v4651_v55 = vadd.f32 %v1700_v50, %v304_v37  ;;  %v4655_v56 = vadd.f32 %v1786_v53, %v312_v38  ;;  %v4820_v46 = vld [vmem:[%s6941_s3 + $0x228] ss:$16 sps:$4 sm:$0xff]  }
 0x15d   :  { %5099 = verf.f32 %v1977_v47  ;;  %v1985_v54 = vmul.f32 0.70710677, %v4650_v15  ;;  %v1987_v57 = vmul.f32 0.70710677, %v4654_v25  ;;  %v1961_v3 = vmul.f32 0.5, %v4648_v40 }
 0x15e   :  { %5101 = verf.f32 %v1979_v58  ;;  %v1986_v59 = vmul.f32 0.70710677, %v4651_v55  ;;  %v1988_v60 = vmul.f32 0.70710677, %v4655_v56  ;;  %v1963_v4 = vmul.f32 0.5, %v4652_v43 }
 0x15f   :  { %5103 = verf.f32 %v1978_v51  ;;  %v1962_v7 = vmul.f32 0.5, %v4649_v44  ;;  %v1969_v9 = vmul.f32 0.5, %v4650_v15  ;;  %v1964_v12 = vmul.f32 0.5, %v4653_v48  ;;  %v4811_v40 = vld [vmem:[%s6941_s3 + $0x200] ss:$16 sps:$4 sm:$0xff]  }
 0x160   :  { %5105 = verf.f32 %v1980_v52  ;;  %v1971_v14 = vmul.f32 0.5, %v4654_v25  ;;  %v1970_v20 = vmul.f32 0.5, %v4651_v55  ;;  %v1972_v24 = vmul.f32 0.5, %v4655_v56  ;;  %v4819_v43 = vld [vmem:[%s6941_s3 + $0x224] ss:$16 sps:$4 sm:$0xff]  }
 0x161   :  { %5107 = verf.f32 %v1985_v54  ;;  %v4822_v44 = vld [vmem:[%s6941_s3 + $0x22c] ss:$16 sps:$4 sm:$0xff]   ;;  %v4825_v47 = vld [vmem:[%s6941_s3 + $0x244] ss:$16 sps:$4 sm:$0xff]   ;;  %v4823_v15 = vld [vmem:[%s6941_s3 + $0x240] ss:$16 sps:$4 sm:$0xff]  }
 0x162   :  { %5109 = verf.f32 %v1987_v57  ;;  %v4828_v48 = vld [vmem:[%s6941_s3 + $0x24c] ss:$16 sps:$4 sm:$0xff]   ;;  %v4826_v49 = vld [vmem:[%s6941_s3 + $0x248] ss:$16 sps:$4 sm:$0xff]   ;;  %v4831_v50 = vld [vmem:[%s6941_s3 + $0x264] ss:$16 sps:$4 sm:$0xff]  }
 0x163   :  { %5111 = verf.f32 %v1986_v59  ;;  %v4834_v58 = vld [vmem:[%s6941_s3 + $0x26c] ss:$16 sps:$4 sm:$0xff]   ;;  %v4829_v51 = vld [vmem:[%s6941_s3 + $0x260] ss:$16 sps:$4 sm:$0xff]   ;;  %v4832_v52 = vld [vmem:[%s6941_s3 + $0x268] ss:$16 sps:$4 sm:$0xff]  }
 0x164   :  { %5113 = verf.f32 %v1988_v60  ;;  %v4837_v53 = vld [vmem:[%s6941_s3 + $0x284] ss:$16 sps:$4 sm:$0xff]   ;;  %v4840_v54 = vld [vmem:[%s6941_s3 + $0x28c] ss:$16 sps:$4 sm:$0xff]   ;;  %v4835_v25 = vld [vmem:[%s6941_s3 + $0x280] ss:$16 sps:$4 sm:$0xff]  }
 0x165   :  { %v4838_v55 = vld [vmem:[%s6941_s3 + $0x288] ss:$16 sps:$4 sm:$0xff]   ;;  %v4843_v56 = vld [vmem:[%s6941_s3 + $0x2a4] ss:$16 sps:$4 sm:$0xff]   ;;  %v4846_v57 = vld [vmem:[%s6941_s3 + $0x2ac] ss:$16 sps:$4 sm:$0xff]  }
 0x166   :  { %v4841_v59 = vld [vmem:[%s6941_s3 + $0x2a0] ss:$16 sps:$4 sm:$0xff]   ;;  %v4844_v60 = vld [vmem:[%s6941_s3 + $0x2a8] ss:$16 sps:$4 sm:$0xff]  }
 0x167   :  { %v5100_v61 = vpop.eup %5099 }
 0x168   :  { %v5102_v62 = vpop.eup %5101  ;;  %v2009_v1 = vadd.f32 1.0, %v5100_v61  ;;  %v4849_v61 = vld [vmem:[%s6941_s3 + $0x2c4] ss:$16 sps:$4 sm:$0xff]  }
 0x169   :  { %v5104_v63 = vpop.eup %5103  ;;  %v2011_v5 = vadd.f32 1.0, %v5102_v62  ;;  %v4852_v62 = vld [vmem:[%s6941_s3 + $0x2cc] ss:$16 sps:$4 sm:$0xff]  }
 0x16a   :  { %v5106_v0 = vpop.eup %5105  ;;  %v2010_v8 = vadd.f32 1.0, %v5104_v63  ;;  %v2025_v18 = vmul.f32 %v2009_v1, %v1961_v3  ;;  %v4847_v63 = vld [vmem:[%s6941_s3 + $0x2c0] ss:$16 sps:$4 sm:$0xff]   ;;  %v4855_v1 = vld [vmem:[%s6941_s3 + $0x2e4] ss:$16 sps:$4 sm:$0xff]  }
 0x16b   :  { %v5108_v2 = vpop.eup %5107  ;;  %v2012_v13 = vadd.f32 1.0, %v5106_v0  ;;  %v2027_v22 = vmul.f32 %v2011_v5, %v1963_v4  ;;  %v4850_v0 = vld [vmem:[%s6941_s3 + $0x2c8] ss:$16 sps:$4 sm:$0xff]   ;;  %v4853_v3 = vld [vmem:[%s6941_s3 + $0x2e0] ss:$16 sps:$4 sm:$0xff]  }
 0x16c   :  { %v5110_v6 = vpop.eup %5109  ;;  %v2017_v10 = vadd.f32 1.0, %v5108_v2  ;;  %v2026_v27 = vmul.f32 %v2010_v8, %v1962_v7  ;;  %v4858_v2 = vld [vmem:[%s6941_s3 + $0x2ec] ss:$16 sps:$4 sm:$0xff]   ;;  %v4856_v4 = vld [vmem:[%s6941_s3 + $0x2e8] ss:$16 sps:$4 sm:$0xff]  }
 0x16d   :  { %v5112_v11 = vpop.eup %5111  ;;  %v2019_v16 = vadd.f32 1.0, %v5110_v6  ;;  %v2028_v36 = vmul.f32 %v2012_v13, %v1964_v12  ;;  %v4861_v5 = vld [vmem:[%s6941_s3 + $0x304] ss:$16 sps:$4 sm:$0xff]   ;;  %v4864_v6 = vld [vmem:[%s6941_s3 + $0x30c] ss:$16 sps:$4 sm:$0xff]  }
 0x16e   :  { %v5114_v17 = vpop.eup %5113  ;;  %v2033_v19 = vmul.f32 %v2017_v10, %v1969_v9  ;;  %v2018_v21 = vadd.f32 1.0, %v5112_v11  ;;  %v4859_v7 = vld [vmem:[%s6941_s3 + $0x300] ss:$16 sps:$4 sm:$0xff]   ;;  %v4862_v8 = vld [vmem:[%s6941_s3 + $0x308] ss:$16 sps:$4 sm:$0xff]  }
 0x16f   :  { %v2035_v23 = vmul.f32 %v2019_v16, %v1971_v14  ;;  %v2020_v26 = vadd.f32 1.0, %v5114_v17  ;;  %v4867_v9 = vld [vmem:[%s6941_s3 + $0x324] ss:$16 sps:$4 sm:$0xff]   ;;  %v4870_v10 = vld [vmem:[%s6941_s3 + $0x32c] ss:$16 sps:$4 sm:$0xff]  }
 0x170   :  { %v2041_v29 = vpack.c.bf16 %v2033_v19, %v2025_v18  ;;  %v2034_v28 = vmul.f32 %v2018_v21, %v1970_v20  ;;  %v4865_v11 = vld [vmem:[%s6941_s3 + $0x320] ss:$16 sps:$4 sm:$0xff]   ;;  %v4868_v12 = vld [vmem:[%s6941_s3 + $0x328] ss:$16 sps:$4 sm:$0xff]   ;;  %v4873_v13 = vld [vmem:[%s6941_s3 + $0x344] ss:$16 sps:$4 sm:$0xff]  }
 0x171   :  { %v6267_v37 = vpack.c.bf16 %v2035_v23, %v2027_v22  ;;  %v2036_v38 = vmul.f32 %v2020_v26, %v1972_v24  ;;  %v4876_v14 = vld [vmem:[%s6941_s3 + $0x34c] ss:$16 sps:$4 sm:$0xff]   ;;  %v4871_v16 = vld [vmem:[%s6941_s3 + $0x340] ss:$16 sps:$4 sm:$0xff]   ;;  %v4874_v17 = vld [vmem:[%s6941_s3 + $0x348] ss:$16 sps:$4 sm:$0xff]  }
 0x172   :  { %v2042_v39 = vpack.c.bf16 %v2034_v28, %v2026_v27  ;;  %v4879_v18 = vld [vmem:[%s6941_s3 + $0x364] ss:$16 sps:$4 sm:$0xff]   ;;  %v4882_v19 = vld [vmem:[%s6941_s3 + $0x36c] ss:$16 sps:$4 sm:$0xff]   ;;  %v4877_v20 = vld [vmem:[%s6941_s3 + $0x360] ss:$16 sps:$4 sm:$0xff]  }
 0x173   :  { %v2044_v42 = vpack.c.bf16 %v2036_v38, %v2028_v36  ;;  %v4880_v21 = vld [vmem:[%s6941_s3 + $0x368] ss:$16 sps:$4 sm:$0xff]   ;;  %v4885_v22 = vld [vmem:[%s6941_s3 + $0x384] ss:$16 sps:$4 sm:$0xff]   ;;  %v4888_v23 = vld [vmem:[%s6941_s3 + $0x38c] ss:$16 sps:$4 sm:$0xff]  }
 0x174   :  { %3639 = vmatprep.mubr.bf16.mxu0 %v2042_v39  ;;  %3811 = vmatprep.mubr.bf16.mxu1 %v2042_v39  ;;  %v4883_v24 = vld [vmem:[%s6941_s3 + $0x380] ss:$16 sps:$4 sm:$0xff]   ;;  %v4886_v26 = vld [vmem:[%s6941_s3 + $0x388] ss:$16 sps:$4 sm:$0xff]   ;;  %v4891_v27 = vld [vmem:[%s6941_s3 + $0x3a4] ss:$16 sps:$4 sm:$0xff]  }
 0x175   :  { %3640 = vmatmul.mubr.bf16.vlgmr.msra.gmra.mrb[8].mxu0 %v2041_v29  ;;  %3812 = vmatmul.mubr.bf16.vlgmr.msra.gmra.mrb[8].mxu1 %v2041_v29  ;;  %v4894_v29 = vld [vmem:[%s6941_s3 + $0x3ac] ss:$16 sps:$4 sm:$0xff]   ;;  %v4889_v28 = vld [vmem:[%s6941_s3 + $0x3a0] ss:$16 sps:$4 sm:$0xff]   ;;  %v4892_v36 = vld [vmem:[%s6941_s3 + $0x3a8] ss:$16 sps:$4 sm:$0xff]  }
 0x176   :  { %3651 = vmatpush1.bf16.msra.mxu0 %v4811_v40  ;;  %3823 = vmatpush1.bf16.msra.mxu1 %v4814_v41  ;;  %v4897_v38 = vld [vmem:[%s6941_s3 + $0x3c4] ss:$16 sps:$4 sm:$0xff]   ;;  %v4900_v39 = vld [vmem:[%s6941_s3 + $0x3cc] ss:$16 sps:$4 sm:$0xff]   ;;  %v4895_v40 = vld [vmem:[%s6941_s3 + $0x3c0] ss:$16 sps:$4 sm:$0xff]  }
 0x177   :  { %3682 = vmatprep.mubr.bf16.mxu0 %v2044_v42  ;;  %3854 = vmatprep.mubr.bf16.mxu1 %v2044_v42  ;;  %v4898_v41 = vld [vmem:[%s6941_s3 + $0x3c8] ss:$16 sps:$4 sm:$0xff]   ;;  %v4903_v42 = vld [vmem:[%s6941_s3 + $0x3e4] ss:$16 sps:$4 sm:$0xff]  }
 0x178   :  { %3652 = vmatprep.subr.bf16.mxu0 %v4819_v43  ;;  %3824 = vmatprep.subr.bf16.mxu1 %v4822_v44  ;;  %v4906_v43 = vld [vmem:[%s6941_s3 + $0x3ec] ss:$16 sps:$4 sm:$0xff]   ;;  %v4901_v44 = vld [vmem:[%s6941_s3 + $0x3e0] ss:$16 sps:$4 sm:$0xff]  }
 0x17a   :  { %3653 = vmatpush1.bf16.msra.mxu0 %v4817_v45  ;;  %3825 = vmatpush1.bf16.msra.mxu1 %v4820_v46  ;;  %v4904_v45 = vld [vmem:[%s6941_s3 + $0x3e8] ss:$16 sps:$4 sm:$0xff]   ;;  %v4909_v46 = vld [vmem:[%s6941_s3 + $0x404] ss:$16 sps:$4 sm:$0xff]  }
 0x17b   :  { %3654 = vmatprep.subr.bf16.mxu0 %v4825_v47  ;;  %3826 = vmatprep.subr.bf16.mxu1 %v4828_v48  ;;  %v4912_v47 = vld [vmem:[%s6941_s3 + $0x40c] ss:$16 sps:$4 sm:$0xff]   ;;  %v4907_v48 = vld [vmem:[%s6941_s3 + $0x400] ss:$16 sps:$4 sm:$0xff]  }
 0x17e   :  { %3655 = vmatpush1.bf16.msra.mxu0 %v4823_v15  ;;  %3827 = vmatpush1.bf16.msra.mxu1 %v4826_v49  ;;  %v4910_v15 = vld [vmem:[%s6941_s3 + $0x408] ss:$16 sps:$4 sm:$0xff]   ;;  %v4915_v49 = vld [vmem:[%s6941_s3 + $0x424] ss:$16 sps:$4 sm:$0xff]  }
 0x17f   :  { %3656 = vmatprep.subr.bf16.mxu0 %v4831_v50  ;;  %3828 = vmatprep.subr.bf16.mxu1 %v4834_v58  ;;  %v4918_v50 = vld [vmem:[%s6941_s3 + $0x42c] ss:$16 sps:$4 sm:$0xff]   ;;  %v4913_v58 = vld [vmem:[%s6941_s3 + $0x420] ss:$16 sps:$4 sm:$0xff]  }
 0x182   :  { %3657 = vmatpush1.bf16.msra.mxu0 %v4829_v51  ;;  %3829 = vmatpush1.bf16.msra.mxu1 %v4832_v52  ;;  %v4916_v51 = vld [vmem:[%s6941_s3 + $0x428] ss:$16 sps:$4 sm:$0xff]   ;;  %v4921_v52 = vld [vmem:[%s6941_s3 + $0x444] ss:$16 sps:$4 sm:$0xff]  }
 0x183   :  { %3658 = vmatprep.subr.bf16.mxu0 %v4837_v53  ;;  %3830 = vmatprep.subr.bf16.mxu1 %v4840_v54  ;;  %v4919_v53 = vld [vmem:[%s6941_s3 + $0x440] ss:$16 sps:$4 sm:$0xff]   ;;  %v4922_v54 = vld [vmem:[%s6941_s3 + $0x448] ss:$16 sps:$4 sm:$0xff]  }
 0x186   :  { %3659 = vmatpush1.bf16.msra.mxu0 %v4835_v25  ;;  %3831 = vmatpush1.bf16.msra.mxu1 %v4838_v55  ;;  %v4927_v25 = vld [vmem:[%s6941_s3 + $0x464] ss:$16 sps:$4 sm:$0xff]   ;;  %v4930_v55 = vld [vmem:[%s6941_s3 + $0x46c] ss:$16 sps:$4 sm:$0xff]  }
 0x187   :  { %3660 = vmatprep.subr.bf16.mxu0 %v4843_v56  ;;  %3832 = vmatprep.subr.bf16.mxu1 %v4846_v57  ;;  %v4925_v56 = vld [vmem:[%s6941_s3 + $0x460] ss:$16 sps:$4 sm:$0xff]   ;;  %v4928_v57 = vld [vmem:[%s6941_s3 + $0x468] ss:$16 sps:$4 sm:$0xff]  }
 0x18a   :  { %3661 = vmatpush1.bf16.msra.mxu0 %v4841_v59  ;;  %3833 = vmatpush1.bf16.msra.mxu1 %v4844_v60  ;;  %v4933_v59 = vld [vmem:[%s6941_s3 + $0x484] ss:$16 sps:$4 sm:$0xff]   ;;  %v4936_v60 = vld [vmem:[%s6941_s3 + $0x48c] ss:$16 sps:$4 sm:$0xff]  }
 0x18b   :  { %3662 = vmatprep.subr.bf16.mxu0 %v4849_v61  ;;  %3834 = vmatprep.subr.bf16.mxu1 %v4852_v62  ;;  %v4931_v61 = vld [vmem:[%s6941_s3 + $0x480] ss:$16 sps:$4 sm:$0xff]   ;;  %v4934_v62 = vld [vmem:[%s6941_s3 + $0x488] ss:$16 sps:$4 sm:$0xff]  }
 0x18e   :  { %3663 = vmatpush1.bf16.msra.mxu0 %v4847_v63  ;;  %3835 = vmatpush1.bf16.msra.mxu1 %v4850_v0  ;;  %v4939_v63 = vld [vmem:[%s6941_s3 + $0x4a4] ss:$16 sps:$4 sm:$0xff]   ;;  %v4942_v0 = vld [vmem:[%s6941_s3 + $0x4ac] ss:$16 sps:$4 sm:$0xff]  }
 0x18f   :  { %3664 = vmatprep.subr.bf16.mxu0 %v4855_v1  ;;  %3836 = vmatprep.subr.bf16.mxu1 %v4858_v2  ;;  %v4937_v1 = vld [vmem:[%s6941_s3 + $0x4a0] ss:$16 sps:$4 sm:$0xff]   ;;  %v4940_v2 = vld [vmem:[%s6941_s3 + $0x4a8] ss:$16 sps:$4 sm:$0xff]  }
 0x192   :  { %3665 = vmatpush1.bf16.msra.mxu0 %v4853_v3  ;;  %3837 = vmatpush1.bf16.msra.mxu1 %v4856_v4  ;;  %v4945_v3 = vld [vmem:[%s6941_s3 + $0x4c4] ss:$16 sps:$4 sm:$0xff]   ;;  %v4948_v4 = vld [vmem:[%s6941_s3 + $0x4cc] ss:$16 sps:$4 sm:$0xff]  }
 0x193   :  { %3666 = vmatprep.subr.bf16.mxu0 %v4861_v5  ;;  %3838 = vmatprep.subr.bf16.mxu1 %v4864_v6  ;;  %v4943_v5 = vld [vmem:[%s6941_s3 + $0x4c0] ss:$16 sps:$4 sm:$0xff]   ;;  %v4946_v6 = vld [vmem:[%s6941_s3 + $0x4c8] ss:$16 sps:$4 sm:$0xff]  }
 0x196   :  { %3667 = vmatpush1.bf16.msra.mxu0 %v4859_v7  ;;  %3839 = vmatpush1.bf16.msra.mxu1 %v4862_v8  ;;  %v4951_v7 = vld [vmem:[%s6941_s3 + $0x4e4] ss:$16 sps:$4 sm:$0xff]   ;;  %v4954_v8 = vld [vmem:[%s6941_s3 + $0x4ec] ss:$16 sps:$4 sm:$0xff]  }
 0x197   :  { %3668 = vmatprep.subr.bf16.mxu0 %v4867_v9  ;;  %3840 = vmatprep.subr.bf16.mxu1 %v4870_v10  ;;  %v4949_v9 = vld [vmem:[%s6941_s3 + $0x4e0] ss:$16 sps:$4 sm:$0xff]   ;;  %v4952_v10 = vld [vmem:[%s6941_s3 + $0x4e8] ss:$16 sps:$4 sm:$0xff]  }
 0x19a   :  { %3669 = vmatpush1.bf16.msra.mxu0 %v4865_v11  ;;  %3841 = vmatpush1.bf16.msra.mxu1 %v4868_v12  ;;  %v4957_v11 = vld [vmem:[%s6941_s3 + $0x504] ss:$16 sps:$4 sm:$0xff]   ;;  %v4960_v12 = vld [vmem:[%s6941_s3 + $0x50c] ss:$16 sps:$4 sm:$0xff]  }
 0x19b   :  { %3670 = vmatprep.subr.bf16.mxu0 %v4873_v13  ;;  %3842 = vmatprep.subr.bf16.mxu1 %v4876_v14  ;;  %v315_v13 = vsub.s32 4, %v6240_v30  ;;  %v4955_v14 = vld [vmem:[%s6941_s3 + $0x500] ss:$16 sps:$4 sm:$0xff]  }
 0x19e   :  { %3671 = vmatpush1.bf16.msra.mxu0 %v4871_v16  ;;  %3843 = vmatpush1.bf16.msra.mxu1 %v4874_v17  ;;  %v4958_v16 = vld [vmem:[%s6941_s3 + $0x508] ss:$16 sps:$4 sm:$0xff]   ;;  %v323_v17 = vsub.s32 6, %v6240_v30 }
 0x19f   :  { %3672 = vmatprep.subr.bf16.mxu0 %v4879_v18  ;;  %3844 = vmatprep.subr.bf16.mxu1 %v4882_v19  ;;  %v319_v18 = vsub.s32 5, %v6240_v30  ;;  %v4963_v19 = vld [vmem:[%s6941_s3 + $0x524] ss:$16 sps:$4 sm:$0xff]  }
 0x1a2   :  { %3673 = vmatpush1.bf16.msra.mxu0 %v4877_v20  ;;  %3845 = vmatpush1.bf16.msra.mxu1 %v4880_v21  ;;  %v4966_v20 = vld [vmem:[%s6941_s3 + $0x52c] ss:$16 sps:$4 sm:$0xff]   ;;  %v327_v21 = vsub.s32 7, %v6240_v30 }
 0x1a3   :  { %3674 = vmatprep.subr.bf16.mxu0 %v4885_v22  ;;  %3846 = vmatprep.subr.bf16.mxu1 %v4888_v23  ;;  %v316_v22 = vrot.slane %v6248_v32, %v315_v13  ;;  %v4961_v23 = vld [vmem:[%s6941_s3 + $0x520] ss:$16 sps:$4 sm:$0xff]  }
 0x1a4   :  { %v328_v30 = vrot.slane %v6248_v32, %v327_v21 }
 0x1a6   :  { %3675 = vmatpush1.bf16.msra.mxu0 %v4883_v24  ;;  %3847 = vmatpush1.bf16.msra.mxu1 %v4886_v26  ;;  %v4964_v24 = vld [vmem:[%s6941_s3 + $0x528] ss:$16 sps:$4 sm:$0xff]   ;;  %v324_v26 = vrot.slane %v6248_v32, %v323_v17  ;;  %v4999_v17 = vld [vmem:[%s6941_s3 + $0x5e4] ss:$16 sps:$4 sm:$0xff]  }
 0x1a7   :  { %3676 = vmatprep.subr.bf16.mxu0 %v4891_v27  ;;  %3848 = vmatprep.subr.bf16.mxu1 %v4894_v29  ;;  %v320_v27 = vrot.slane %v6248_v32, %v319_v18  ;;  %v4969_v29 = vld [vmem:[%s6941_s3 + $0x544] ss:$16 sps:$4 sm:$0xff]  }
 0x1aa   :  { %3677 = vmatpush1.bf16.msra.mxu0 %v4889_v28  ;;  %3849 = vmatpush1.bf16.msra.mxu1 %v4892_v36  ;;  %v4972_v28 = vld [vmem:[%s6941_s3 + $0x54c] ss:$16 sps:$4 sm:$0xff]  }
 0x1ab   :  { %3678 = vmatprep.subr.bf16.mxu0 %v4897_v38  ;;  %3850 = vmatprep.subr.bf16.mxu1 %v4900_v39 }
 0x1ae   :  { %3679 = vmatpush1.bf16.msra.mxu0 %v4895_v40  ;;  %3851 = vmatpush1.bf16.msra.mxu1 %v4898_v41  ;;  %v4967_v41 = vld [vmem:[%s6941_s3 + $0x540] ss:$16 sps:$4 sm:$0xff]  }
 0x1af   :  { %3680 = vmatprep.subr.bf16.mxu0 %v4903_v42  ;;  %3852 = vmatprep.subr.bf16.mxu1 %v4906_v43 }
 0x1b2   :  { %3681 = vmatpush1.bf16.msra.mxu0 %v4901_v44  ;;  %3853 = vmatpush1.bf16.msra.mxu1 %v4904_v45  ;;  %v4970_v44 = vld [vmem:[%s6941_s3 + $0x548] ss:$16 sps:$4 sm:$0xff]  }
 0x1b3   :  { %3693 = vmatprep.subr.bf16.mxu0 %v4909_v46  ;;  %3865 = vmatprep.subr.bf16.mxu1 %v4912_v47  ;;  %v4975_v46 = vld [vmem:[%s6941_s3 + $0x564] ss:$16 sps:$4 sm:$0xff]  }
 0x1b5   :  { %3683 = vmatmul.mubr.bf16.vlgmr.msra.gmra.mrb[8].mxu0 %v6267_v37  ;;  %3855 = vmatmul.mubr.bf16.vlgmr.msra.gmra.mrb[8].mxu1 %v6267_v37  ;;  %v4924_v37 = vld [vmem:[%s6941_s3 + $0x44c] ss:$16 sps:$4 sm:$0xff]  }
 0x1b6   :  { %3694 = vmatpush1.bf16.msra.mxu0 %v4907_v48  ;;  %3866 = vmatpush1.bf16.msra.mxu1 %v4910_v15 }
 0x1b7   :  { %3695 = vmatprep.subr.bf16.mxu0 %v4915_v49  ;;  %3867 = vmatprep.subr.bf16.mxu1 %v4918_v50 }
 0x1ba   :  { %3696 = vmatpush1.bf16.msra.mxu0 %v4913_v58  ;;  %3868 = vmatpush1.bf16.msra.mxu1 %v4916_v51  ;;  %v4978_v58 = vld [vmem:[%s6941_s3 + $0x56c] ss:$16 sps:$4 sm:$0xff]  }
 0x1bb   :  { %3697 = vmatprep.subr.bf16.mxu0 %v4921_v52  ;;  %3869 = vmatprep.subr.bf16.mxu1 %v4924_v37 }
 0x1be   :  { %3698 = vmatpush1.bf16.msra.mxu0 %v4919_v53  ;;  %3870 = vmatpush1.bf16.msra.mxu1 %v4922_v54 }
 0x1bf   :  { %3699 = vmatprep.subr.bf16.mxu0 %v4927_v25  ;;  %3871 = vmatprep.subr.bf16.mxu1 %v4930_v55 }
 0x1c2   :  { %3700 = vmatpush1.bf16.msra.mxu0 %v4925_v56  ;;  %3872 = vmatpush1.bf16.msra.mxu1 %v4928_v57  ;;  %v4973_v56 = vld [vmem:[%s6941_s3 + $0x560] ss:$16 sps:$4 sm:$0xff]   ;;  %v4976_v57 = vld [vmem:[%s6941_s3 + $0x568] ss:$16 sps:$4 sm:$0xff]  }
 0x1c3   :  { %3701 = vmatprep.subr.bf16.mxu0 %v4933_v59  ;;  %3873 = vmatprep.subr.bf16.mxu1 %v4936_v60  ;;  %v4981_v60 = vld [vmem:[%s6941_s3 + $0x584] ss:$16 sps:$4 sm:$0xff]  }
 0x1c6   :  { %3702 = vmatpush1.bf16.msra.mxu0 %v4931_v61  ;;  %3874 = vmatpush1.bf16.msra.mxu1 %v4934_v62  ;;  %v4984_v61 = vld [vmem:[%s6941_s3 + $0x58c] ss:$16 sps:$4 sm:$0xff]  }
 0x1c7   :  { %3703 = vmatprep.subr.bf16.mxu0 %v4939_v63  ;;  %3875 = vmatprep.subr.bf16.mxu1 %v4942_v0 }
 0x1ca   :  { %3704 = vmatpush1.bf16.msra.mxu0 %v4937_v1  ;;  %3876 = vmatpush1.bf16.msra.mxu1 %v4940_v2  ;;  %v4979_v1 = vld [vmem:[%s6941_s3 + $0x580] ss:$16 sps:$4 sm:$0xff]   ;;  %v4982_v2 = vld [vmem:[%s6941_s3 + $0x588] ss:$16 sps:$4 sm:$0xff]  }
 0x1cb   :  { %3705 = vmatprep.subr.bf16.mxu0 %v4945_v3  ;;  %3877 = vmatprep.subr.bf16.mxu1 %v4948_v4  ;;  %v4987_v3 = vld [vmem:[%s6941_s3 + $0x5a4] ss:$16 sps:$4 sm:$0xff]   ;;  %v4990_v4 = vld [vmem:[%s6941_s3 + $0x5ac] ss:$16 sps:$4 sm:$0xff]  }
 0x1ce   :  { %3706 = vmatpush1.bf16.msra.mxu0 %v4943_v5  ;;  %3878 = vmatpush1.bf16.msra.mxu1 %v4946_v6  ;;  %v4985_v5 = vld [vmem:[%s6941_s3 + $0x5a0] ss:$16 sps:$4 sm:$0xff]   ;;  %v4988_v6 = vld [vmem:[%s6941_s3 + $0x5a8] ss:$16 sps:$4 sm:$0xff]  }
 0x1cf   :  { %3707 = vmatprep.subr.bf16.mxu0 %v4951_v7  ;;  %3879 = vmatprep.subr.bf16.mxu1 %v4954_v8  ;;  %v4993_v8 = vld [vmem:[%s6941_s3 + $0x5c4] ss:$16 sps:$4 sm:$0xff]  }
 0x1d2   :  { %3708 = vmatpush1.bf16.msra.mxu0 %v4949_v9  ;;  %3880 = vmatpush1.bf16.msra.mxu1 %v4952_v10  ;;  %v4996_v9 = vld [vmem:[%s6941_s3 + $0x5cc] ss:$16 sps:$4 sm:$0xff]  }
 0x1d3   :  { %3709 = vmatprep.subr.bf16.mxu0 %v4957_v11  ;;  %3881 = vmatprep.subr.bf16.mxu1 %v4960_v12  ;;  %v4991_v12 = vld [vmem:[%s6941_s3 + $0x5c0] ss:$16 sps:$4 sm:$0xff]  }
 0x1d6   :  { %3710 = vmatpush1.bf16.msra.mxu0 %v4955_v14  ;;  %3882 = vmatpush1.bf16.msra.mxu1 %v4958_v16  ;;  %v4994_v16 = vld [vmem:[%s6941_s3 + $0x5c8] ss:$16 sps:$4 sm:$0xff]  }
 0x1d7   :  { %3711 = vmatprep.subr.bf16.mxu0 %v4963_v19  ;;  %3883 = vmatprep.subr.bf16.mxu1 %v4966_v20 }
 0x1d8   :  { %v1866_v36 = vpop.f32.mrb[4].mxu0  ;;  %v1952_v39 = vpop.f32.mrb[4].mxu1 }
 0x1d9   :  { %v6591_v38 = vadd.f32 %v1866_v36, %v316_v22  ;;  %v1868_v40 = vpop.f32.mrb[5].mxu0  ;;  %v6596_v32 = vadd.f32 %v1952_v39, %v324_v26  ;;  %v1954_v43 = vpop.f32.mrb[5].mxu1 }
 0x1da   :  { %3712 = vmatpush1.bf16.msra.mxu0 %v4961_v23  ;;  %3884 = vmatpush1.bf16.msra.mxu1 %v4964_v24  ;;  %v6598_v42 = vadd.f32 %v1868_v40, %v320_v27  ;;  %v1870_v45 = vpop.f32.mrb[6].mxu0  ;;  %v6607_v48 = vadd.f32 %v1954_v43, %v328_v30  ;;  %v1956_v49 = vpop.f32.mrb[6].mxu1 }
 0x1db   :  { %v1981_v47 = vmul.f32 0.70710677, %v6591_v38  ;;  %3713 = vmatprep.subr.bf16.mxu0 %v4969_v29  ;;  %3885 = vmatprep.subr.bf16.mxu1 %v4972_v28  ;;  %v6609_v15 = vadd.f32 %v1870_v45, %v316_v22  ;;  %v1872_v50 = vpop.f32.mrb[7].mxu0  ;;  %v1983_v51 = vmul.f32 0.70710677, %v6596_v32  ;;  %v1958_v53 = vpop.f32.mrb[7].mxu1  ;;  %v4662_v25 = vadd.f32 %v1956_v49, %v324_v26 }
 0x1dc   :  { %v1982_v52 = vmul.f32 0.70710677, %v6598_v42  ;;  %v1984_v37 = vmul.f32 0.70710677, %v6607_v48  ;;  %v6618_v55 = vadd.f32 %v1872_v50, %v320_v27  ;;  %v6626_v59 = vadd.f32 %v1958_v53, %v328_v30  ;;  %v5002_v22 = vld [vmem:[%s6941_s3 + $0x5ec] ss:$16 sps:$4 sm:$0xff]  }
 0x1dd   :  { %5115 = verf.f32 %v1981_v47  ;;  %v1989_v54 = vmul.f32 0.70710677, %v6609_v15  ;;  %v1991_v62 = vmul.f32 0.70710677, %v4662_v25  ;;  %v1965_v19 = vmul.f32 0.5, %v6591_v38 }
 0x1de   :  { %5117 = verf.f32 %v1983_v51  ;;  %3714 = vmatpush1.bf16.msra.mxu0 %v4967_v41  ;;  %3886 = vmatpush1.bf16.msra.mxu1 %v4970_v44  ;;  %v1990_v63 = vmul.f32 0.70710677, %v6618_v55  ;;  %v1992_v0 = vmul.f32 0.70710677, %v6626_v59  ;;  %v1967_v20 = vmul.f32 0.5, %v6596_v32 }
 0x1df   :  { %5119 = verf.f32 %v1982_v52  ;;  %3715 = vmatprep.subr.bf16.mxu0 %v4975_v46  ;;  %3887 = vmatprep.subr.bf16.mxu1 %v4978_v58  ;;  %v1966_v24 = vmul.f32 0.5, %v6598_v42  ;;  %v1973_v27 = vmul.f32 0.5, %v6609_v15  ;;  %v1968_v28 = vmul.f32 0.5, %v6607_v48  ;;  %v4997_v42 = vld [vmem:[%s6941_s3 + $0x5e0] ss:$16 sps:$4 sm:$0xff]  }
 0x1e0   :  { %5121 = verf.f32 %v1984_v37  ;;  %v1975_v38 = vmul.f32 0.5, %v4662_v25  ;;  %v1974_v43 = vmul.f32 0.5, %v6618_v55  ;;  %v5000_v45 = vld [vmem:[%s6941_s3 + $0x5e8] ss:$16 sps:$4 sm:$0xff]   ;;  %v1976_v48 = vmul.f32 0.5, %v6626_v59 }
 0x1e1   :  { %5123 = verf.f32 %v1989_v54  ;;  %v5005_v49 = vld [vmem:[%s6941_s3 + $0x604] ss:$16 sps:$4 sm:$0xff]   ;;  %v5008_v50 = vld [vmem:[%s6941_s3 + $0x60c] ss:$16 sps:$4 sm:$0xff]   ;;  %v5003_v55 = vld [vmem:[%s6941_s3 + $0x600] ss:$16 sps:$4 sm:$0xff]  }
 0x1e2   :  { %5125 = verf.f32 %v1991_v62  ;;  %3716 = vmatpush1.bf16.msra.mxu0 %v4973_v56  ;;  %3888 = vmatpush1.bf16.msra.mxu1 %v4976_v57  ;;  %v5006_v56 = vld [vmem:[%s6941_s3 + $0x608] ss:$16 sps:$4 sm:$0xff]   ;;  %v5011_v59 = vld [vmem:[%s6941_s3 + $0x624] ss:$16 sps:$4 sm:$0xff]  }
 0x1e3   :  { %5127 = verf.f32 %v1990_v63  ;;  %3717 = vmatprep.subr.bf16.mxu0 %v4981_v60  ;;  %3889 = vmatprep.subr.bf16.mxu1 %v4984_v61  ;;  %v5014_v60 = vld [vmem:[%s6941_s3 + $0x62c] ss:$16 sps:$4 sm:$0xff]   ;;  %v5009_v61 = vld [vmem:[%s6941_s3 + $0x620] ss:$16 sps:$4 sm:$0xff]   ;;  %v5012_v62 = vld [vmem:[%s6941_s3 + $0x628] ss:$16 sps:$4 sm:$0xff]  }
 0x1e4   :  { %5129 = verf.f32 %v1992_v0  ;;  %v5017_v63 = vld [vmem:[%s6941_s3 + $0x644] ss:$16 sps:$4 sm:$0xff]   ;;  %v5020_v0 = vld [vmem:[%s6941_s3 + $0x64c] ss:$16 sps:$4 sm:$0xff]  }
 0x1e6   :  { %3718 = vmatpush1.bf16.msra.mxu0 %v4979_v1  ;;  %3890 = vmatpush1.bf16.msra.mxu1 %v4982_v2  ;;  %v5015_v1 = vld [vmem:[%s6941_s3 + $0x640] ss:$16 sps:$4 sm:$0xff]   ;;  %v5018_v2 = vld [vmem:[%s6941_s3 + $0x648] ss:$16 sps:$4 sm:$0xff]  }
 0x1e7   :  { %v5116_v7 = vpop.eup %5115  ;;  %3719 = vmatprep.subr.bf16.mxu0 %v4987_v3  ;;  %3891 = vmatprep.subr.bf16.mxu1 %v4990_v4  ;;  %v5023_v3 = vld [vmem:[%s6941_s3 + $0x664] ss:$16 sps:$4 sm:$0xff]   ;;  %v5026_v4 = vld [vmem:[%s6941_s3 + $0x66c] ss:$16 sps:$4 sm:$0xff]  }
 0x1e8   :  { %v5118_v10 = vpop.eup %5117  ;;  %v2013_v14 = vadd.f32 1.0, %v5116_v7  ;;  %v5029_v7 = vld [vmem:[%s6941_s3 + $0x684] ss:$16 sps:$4 sm:$0xff]  }
 0x1e9   :  { %v5120_v11 = vpop.eup %5119  ;;  %v2015_v21 = vadd.f32 1.0, %v5118_v10  ;;  %v5030_v10 = vld [vmem:[%s6941_s3 + $0x688] ss:$16 sps:$4 sm:$0xff]  }
 0x1ea   :  { %v5122_v13 = vpop.eup %5121  ;;  %3720 = vmatpush1.bf16.msra.mxu0 %v4985_v5  ;;  %3892 = vmatpush1.bf16.msra.mxu1 %v4988_v6  ;;  %v2014_v26 = vadd.f32 1.0, %v5120_v11  ;;  %v2029_v41 = vmul.f32 %v2013_v14, %v1965_v19  ;;  %v5021_v5 = vld [vmem:[%s6941_s3 + $0x660] ss:$16 sps:$4 sm:$0xff]   ;;  %v5024_v6 = vld [vmem:[%s6941_s3 + $0x668] ss:$16 sps:$4 sm:$0xff]  }
 0x1eb   :  { %v5124_v18 = vpop.eup %5123  ;;  %3721 = vmatprep.subr.bf16.mxu0 %v4993_v8  ;;  %3893 = vmatprep.subr.bf16.mxu1 %v4996_v9  ;;  %v2016_v36 = vadd.f32 1.0, %v5122_v13  ;;  %v2031_v46 = vmul.f32 %v2015_v21, %v1967_v20  ;;  %v5032_v8 = vld [vmem:[%s6941_s3 + $0x68c] ss:$16 sps:$4 sm:$0xff]   ;;  %v5027_v9 = vld [vmem:[%s6941_s3 + $0x680] ss:$16 sps:$4 sm:$0xff]  }
 0x1ec   :  { %v5126_v23 = vpop.eup %5125  ;;  %v2021_v30 = vadd.f32 1.0, %v5124_v18  ;;  %v2030_v58 = vmul.f32 %v2014_v26, %v1966_v24  ;;  %v5035_v11 = vld [vmem:[%s6941_s3 + $0x6a4] ss:$16 sps:$4 sm:$0xff]   ;;  %v5033_v13 = vld [vmem:[%s6941_s3 + $0x6a0] ss:$16 sps:$4 sm:$0xff]  }
 0x1ed   :  { %v5128_v29 = vpop.eup %5127  ;;  %v2023_v39 = vadd.f32 1.0, %v5126_v23  ;;  %v2032_v37 = vmul.f32 %v2016_v36, %v1968_v28  ;;  %v5036_v14 = vld [vmem:[%s6941_s3 + $0x6a8] ss:$16 sps:$4 sm:$0xff]   ;;  %v5039_v18 = vld [vmem:[%s6941_s3 + $0x6c0] ss:$16 sps:$4 sm:$0xff]  }
 0x1ee   :  { %v5130_v40 = vpop.eup %5129  ;;  %v2037_v32 = vmul.f32 %v2021_v30, %v1973_v27  ;;  %v2022_v44 = vadd.f32 1.0, %v5128_v29  ;;  %3722 = vmatpush1.bf16.msra.mxu0 %v4991_v12  ;;  %3894 = vmatpush1.bf16.msra.mxu1 %v4994_v16  ;;  %v5038_v12 = vld [vmem:[%s6941_s3 + $0x6ac] ss:$16 sps:$4 sm:$0xff]   ;;  %v5041_v16 = vld [vmem:[%s6941_s3 + $0x6c4] ss:$16 sps:$4 sm:$0xff]  }
 0x1ef   :  { %v2039_v47 = vmul.f32 %v2023_v39, %v1975_v38  ;;  %v2024_v15 = vadd.f32 1.0, %v5130_v40  ;;  %3723 = vmatprep.subr.bf16.mxu0 %v4999_v17  ;;  %3895 = vmatprep.subr.bf16.mxu1 %v5002_v22  ;;  %v5044_v17 = vld [vmem:[%s6941_s3 + $0x6cc] ss:$16 sps:$4 sm:$0xff]   ;;  %v5042_v19 = vld [vmem:[%s6941_s3 + $0x6c8] ss:$16 sps:$4 sm:$0xff]  }
 0x1f0   :  { %v2045_v51 = vpack.c.bf16 %v2037_v32, %v2029_v41  ;;  %v2038_v52 = vmul.f32 %v2022_v44, %v1974_v43  ;;  %v5047_v20 = vld [vmem:[%s6941_s3 + $0x6e4] ss:$16 sps:$4 sm:$0xff]   ;;  %v5050_v21 = vld [vmem:[%s6941_s3 + $0x6ec] ss:$16 sps:$4 sm:$0xff]   ;;  %v5045_v22 = vld [vmem:[%s6941_s3 + $0x6e0] ss:$16 sps:$4 sm:$0xff]  }
 0x1f1   :  { %v6691_v53 = vpack.c.bf16 %v2039_v47, %v2031_v46  ;;  %v2040_v54 = vmul.f32 %v2024_v15, %v1976_v48  ;;  %v5048_v23 = vld [vmem:[%s6941_s3 + $0x6e8] ss:$16 sps:$4 sm:$0xff]   ;;  %v5053_v24 = vld [vmem:[%s6941_s3 + $0x704] ss:$16 sps:$4 sm:$0xff]   ;;  %v5056_v26 = vld [vmem:[%s6941_s3 + $0x70c] ss:$16 sps:$4 sm:$0xff]  }
 0x1f2   :  { %3724 = vmatpush1.bf16.msra.mxu0 %v4997_v42  ;;  %3896 = vmatpush1.bf16.msra.mxu1 %v5000_v45  ;;  %v2046_v25 = vpack.c.bf16 %v2038_v52, %v2030_v58  ;;  %v5051_v27 = vld [vmem:[%s6941_s3 + $0x700] ss:$16 sps:$4 sm:$0xff]   ;;  %v5054_v30 = vld [vmem:[%s6941_s3 + $0x708] ss:$16 sps:$4 sm:$0xff]   ;;  %v5059_v29 = vld [vmem:[%s6941_s3 + $0x724] ss:$16 sps:$4 sm:$0xff]  }
 0x1f3   :  { %3736 = vmatprep.subr.bf16.mxu0 %v5005_v49  ;;  %3908 = vmatprep.subr.bf16.mxu1 %v5008_v50  ;;  %v2048_v57 = vpack.c.bf16 %v2040_v54, %v2032_v37  ;;  %v5062_v28 = vld [vmem:[%s6941_s3 + $0x72c] ss:$16 sps:$4 sm:$0xff]   ;;  %v5057_v36 = vld [vmem:[%s6941_s3 + $0x720] ss:$16 sps:$4 sm:$0xff]   ;;  %v5060_v38 = vld [vmem:[%s6941_s3 + $0x728] ss:$16 sps:$4 sm:$0xff]  }
 0x1f4   :  { %3725 = vmatprep.mubr.bf16.mxu0 %v2046_v25  ;;  %3897 = vmatprep.mubr.bf16.mxu1 %v2046_v25  ;;  %v5065_v39 = vld [vmem:[%s6941_s3 + $0x744] ss:$16 sps:$4 sm:$0xff]   ;;  %v5068_v40 = vld [vmem:[%s6941_s3 + $0x74c] ss:$16 sps:$4 sm:$0xff]   ;;  %v5063_v41 = vld [vmem:[%s6941_s3 + $0x740] ss:$16 sps:$4 sm:$0xff]  }
 0x1f5   :  { %3726 = vmatmul.mubr.bf16.vlgmr.msra.gmra.mrb[8].mxu0 %v2045_v51  ;;  %3898 = vmatmul.mubr.bf16.vlgmr.msra.gmra.mrb[8].mxu1 %v2045_v51  ;;  %v5066_v32 = vld [vmem:[%s6941_s3 + $0x748] ss:$16 sps:$4 sm:$0xff]   ;;  %v5071_v43 = vld [vmem:[%s6941_s3 + $0x764] ss:$16 sps:$4 sm:$0xff]   ;;  %v5074_v44 = vld [vmem:[%s6941_s3 + $0x76c] ss:$16 sps:$4 sm:$0xff]  }
 0x1f6   :  { %3737 = vmatpush1.bf16.msra.mxu0 %v5003_v55  ;;  %3909 = vmatpush1.bf16.msra.mxu1 %v5006_v56  ;;  %v5069_v42 = vld [vmem:[%s6941_s3 + $0x760] ss:$16 sps:$4 sm:$0xff]   ;;  %v5072_v45 = vld [vmem:[%s6941_s3 + $0x768] ss:$16 sps:$4 sm:$0xff]   ;;  %v5077_v46 = vld [vmem:[%s6941_s3 + $0x784] ss:$16 sps:$4 sm:$0xff]  }
 0x1f7   :  { %3768 = vmatprep.mubr.bf16.mxu0 %v2048_v57  ;;  %3940 = vmatprep.mubr.bf16.mxu1 %v2048_v57  ;;  %v5080_v47 = vld [vmem:[%s6941_s3 + $0x78c] ss:$16 sps:$4 sm:$0xff]   ;;  %v5075_v48 = vld [vmem:[%s6941_s3 + $0x780] ss:$16 sps:$4 sm:$0xff]   ;;  %v5078_v15 = vld [vmem:[%s6941_s3 + $0x788] ss:$16 sps:$4 sm:$0xff]  }
 0x1f8   :  { %3738 = vmatprep.subr.bf16.mxu0 %v5011_v59  ;;  %3910 = vmatprep.subr.bf16.mxu1 %v5014_v60  ;;  %v5083_v49 = vld [vmem:[%s6941_s3 + $0x7a4] ss:$16 sps:$4 sm:$0xff]   ;;  %v5086_v50 = vld [vmem:[%s6941_s3 + $0x7ac] ss:$16 sps:$4 sm:$0xff]   ;;  %v5081_v58 = vld [vmem:[%s6941_s3 + $0x7a0] ss:$16 sps:$4 sm:$0xff]  }
 0x1f9   :  { %v5084_v51 = vld [vmem:[%s6941_s3 + $0x7a8] ss:$16 sps:$4 sm:$0xff]   ;;  %v5089_v52 = vld [vmem:[%s6941_s3 + $0x7c4] ss:$16 sps:$4 sm:$0xff]   ;;  %v5092_v37 = vld [vmem:[%s6941_s3 + $0x7cc] ss:$16 sps:$4 sm:$0xff]  }
 0x1fa   :  { %3739 = vmatpush1.bf16.msra.mxu0 %v5009_v61  ;;  %3911 = vmatpush1.bf16.msra.mxu1 %v5012_v62  ;;  %v5087_v54 = vld [vmem:[%s6941_s3 + $0x7c0] ss:$16 sps:$4 sm:$0xff]   ;;  %v5090_v25 = vld [vmem:[%s6941_s3 + $0x7c8] ss:$16 sps:$4 sm:$0xff]   ;;  %v5095_v55 = vld [vmem:[%s6941_s3 + $0x7e4] ss:$16 sps:$4 sm:$0xff]  }
 0x1fb   :  { %3740 = vmatprep.subr.bf16.mxu0 %v5017_v63  ;;  %3912 = vmatprep.subr.bf16.mxu1 %v5020_v0  ;;  %v5098_v56 = vld [vmem:[%s6941_s3 + $0x7ec] ss:$16 sps:$4 sm:$0xff]   ;;  %v5093_v57 = vld [vmem:[%s6941_s3 + $0x7e0] ss:$16 sps:$4 sm:$0xff]   ;;  %v5096_v59 = vld [vmem:[%s6941_s3 + $0x7e8] ss:$16 sps:$4 sm:$0xff]  }
 0x1fc   :  { %v2305_v60 = vld [vmem:[%s6942_s4] sm:$0xf] }
 0x1fd   :  { %v2310_v61 = vrot.slane %v2305_v60, %v6243_v31  ;;  %v2318_v62 = vrot.slane %v2305_v60, %v6251_v33  ;;  %v2314_v63 = vrot.slane %v2305_v60, %v6254_v34  ;;  %v2322_v0 = vrot.slane %v2305_v60, %v6257_v35 }
 0x1fe   :  { %3741 = vmatpush1.bf16.msra.mxu0 %v5015_v1  ;;  %3913 = vmatpush1.bf16.msra.mxu1 %v5018_v2 }
 0x1ff   :  { %3742 = vmatprep.subr.bf16.mxu0 %v5023_v3  ;;  %3914 = vmatprep.subr.bf16.mxu1 %v5026_v4 }
 0x202   :  { %3743 = vmatpush1.bf16.msra.mxu0 %v5021_v5  ;;  %3915 = vmatpush1.bf16.msra.mxu1 %v5024_v6 }
 0x203   :  { %3744 = vmatprep.subr.bf16.mxu0 %v5029_v7  ;;  %3916 = vmatprep.subr.bf16.mxu1 %v5032_v8 }
 0x206   :  { %3745 = vmatpush1.bf16.msra.mxu0 %v5027_v9  ;;  %3917 = vmatpush1.bf16.msra.mxu1 %v5030_v10 }
 0x207   :  { %3746 = vmatprep.subr.bf16.mxu0 %v5035_v11  ;;  %3918 = vmatprep.subr.bf16.mxu1 %v5038_v12 }
 0x20a   :  { %3747 = vmatpush1.bf16.msra.mxu0 %v5033_v13  ;;  %3919 = vmatpush1.bf16.msra.mxu1 %v5036_v14 }
 0x20b   :  { %3748 = vmatprep.subr.bf16.mxu0 %v5041_v16  ;;  %3920 = vmatprep.subr.bf16.mxu1 %v5044_v17 }
 0x20e   :  { %3749 = vmatpush1.bf16.msra.mxu0 %v5039_v18  ;;  %3921 = vmatpush1.bf16.msra.mxu1 %v5042_v19 }
 0x20f   :  { %3750 = vmatprep.subr.bf16.mxu0 %v5047_v20  ;;  %3922 = vmatprep.subr.bf16.mxu1 %v5050_v21 }
 0x212   :  { %3751 = vmatpush1.bf16.msra.mxu0 %v5045_v22  ;;  %3923 = vmatpush1.bf16.msra.mxu1 %v5048_v23 }
 0x213   :  { %3752 = vmatprep.subr.bf16.mxu0 %v5053_v24  ;;  %3924 = vmatprep.subr.bf16.mxu1 %v5056_v26 }
 0x216   :  { %3753 = vmatpush1.bf16.msra.mxu0 %v5051_v27  ;;  %3925 = vmatpush1.bf16.msra.mxu1 %v5054_v30 }
 0x217   :  { %3754 = vmatprep.subr.bf16.mxu0 %v5059_v29  ;;  %3926 = vmatprep.subr.bf16.mxu1 %v5062_v28 }
 0x21a   :  { %3755 = vmatpush1.bf16.msra.mxu0 %v5057_v36  ;;  %3927 = vmatpush1.bf16.msra.mxu1 %v5060_v38 }
 0x21b   :  { %3756 = vmatprep.subr.bf16.mxu0 %v5065_v39  ;;  %3928 = vmatprep.subr.bf16.mxu1 %v5068_v40 }
 0x21e   :  { %3757 = vmatpush1.bf16.msra.mxu0 %v5063_v41  ;;  %3929 = vmatpush1.bf16.msra.mxu1 %v5066_v32 }
 0x21f   :  { %3758 = vmatprep.subr.bf16.mxu0 %v5071_v43  ;;  %3930 = vmatprep.subr.bf16.mxu1 %v5074_v44 }
 0x222   :  { %3759 = vmatpush1.bf16.msra.mxu0 %v5069_v42  ;;  %3931 = vmatpush1.bf16.msra.mxu1 %v5072_v45 }
 0x223   :  { %3760 = vmatprep.subr.bf16.mxu0 %v5077_v46  ;;  %3932 = vmatprep.subr.bf16.mxu1 %v5080_v47 }
 0x226   :  { %3761 = vmatpush1.bf16.msra.mxu0 %v5075_v48  ;;  %3933 = vmatpush1.bf16.msra.mxu1 %v5078_v15 }
 0x227   :  { %3762 = vmatprep.subr.bf16.mxu0 %v5083_v49  ;;  %3934 = vmatprep.subr.bf16.mxu1 %v5086_v50  ;;  %v5151_v49 = vld [vmem:[%s6938_s0] sm:$0xff] }
 0x22a   :  { %3763 = vmatpush1.bf16.msra.mxu0 %v5081_v58  ;;  %3935 = vmatpush1.bf16.msra.mxu1 %v5084_v51 }
 0x22b   :  { %3764 = vmatprep.subr.bf16.mxu0 %v5089_v52  ;;  %3936 = vmatprep.subr.bf16.mxu1 %v5092_v37 }
 0x22e   :  { %3765 = vmatpush1.bf16.msra.mxu0 %v5087_v54  ;;  %3937 = vmatpush1.bf16.msra.mxu1 %v5090_v25 }
 0x22f   :  { %3766 = vmatprep.subr.bf16.mxu0 %v5095_v55  ;;  %3938 = vmatprep.subr.bf16.mxu1 %v5098_v56 }
 0x232   :  { %3767 = vmatpush1.bf16.msra.mxu0 %v5093_v57  ;;  %3939 = vmatpush1.bf16.msra.mxu1 %v5096_v59  ;;  %v5152_v57 = vld [vmem:[%s6938_s0 + $0x8] sm:$0xff] }
 0x235   :  { %3769 = vmatmul.mubr.bf16.vlgmr.msra.gmra.mrb[8].mxu0 %v6691_v53  ;;  %3941 = vmatmul.mubr.bf16.vlgmr.msra.gmra.mrb[8].mxu1 %v6691_v53 }
 0x308   :  { %v3770_v1 = vpop.f32.mrb[8].mxu0  ;;  %v3942_v2 = vpop.f32.mrb[8].mxu1 }
 0x309   :  { %v4664_v3 = vadd.f32 %v3770_v1, %v2310_v61  ;;  %v4668_v4 = vadd.f32 %v3942_v2, %v2318_v62  ;;  %v3772_v5 = vpop.f32.mrb[9].mxu0  ;;  %v3944_v6 = vpop.f32.mrb[9].mxu1 }
 0x30a   :  { %v4665_v7 = vadd.f32 %v3772_v5, %v2314_v63  ;;  %v4669_v53 = vadd.f32 %v3944_v6, %v2322_v0  ;;  %v3774_v8 = vpop.f32.mrb[10].mxu0  ;;  %v3946_v9 = vpop.f32.mrb[10].mxu1  ;;  %v5155_v5 = vld [vmem:[%s6938_s0 + $0x28] sm:$0xff] }
 0x30b   :  { %v3959_v10 = vmul.f32 0.70710677, %v4664_v3  ;;  %v3961_v11 = vmul.f32 0.70710677, %v4668_v4  ;;  %v4666_v14 = vadd.f32 %v3774_v8, %v2310_v61  ;;  %v4670_v16 = vadd.f32 %v3946_v9, %v2318_v62  ;;  %v3776_v17 = vpop.f32.mrb[11].mxu0  ;;  %v3948_v18 = vpop.f32.mrb[11].mxu1 }
 0x30c   :  { %v3960_v12 = vmul.f32 0.70710677, %v4665_v7  ;;  %v3962_v13 = vmul.f32 0.70710677, %v4669_v53  ;;  %v4667_v19 = vadd.f32 %v3776_v17, %v2314_v63  ;;  %v4671_v20 = vadd.f32 %v3948_v18, %v2322_v0  ;;  %v5153_v62 = vld [vmem:[%s6938_s0 + $0x10] sm:$0xff]  ;;  %v5154_v0 = vld [vmem:[%s6938_s0 + $0x20] sm:$0xff] }
 0x30d   :  { %5131 = verf.f32 %v3959_v10  ;;  %v3963_v21 = vmul.f32 0.70710677, %v4666_v14  ;;  %v3965_v22 = vmul.f32 0.70710677, %v4670_v16  ;;  %v3951_v30 = vmul.f32 0.5, %v4664_v3 }
 0x30e   :  { %5133 = verf.f32 %v3961_v11  ;;  %v3964_v23 = vmul.f32 0.70710677, %v4667_v19  ;;  %v3966_v24 = vmul.f32 0.70710677, %v4671_v20  ;;  %v3953_v36 = vmul.f32 0.5, %v4668_v4  ;;  %v5157_v11 = vld [vmem:[%s6938_s0 + $0x30] sm:$0xff] }
 0x30f   :  { %5135 = verf.f32 %v3960_v12  ;;  %v3952_v41 = vmul.f32 0.5, %v4665_v7  ;;  %v3954_v42 = vmul.f32 0.5, %v4669_v53  ;;  %v3955_v48 = vmul.f32 0.5, %v4666_v14  ;;  %v5156_v53 = vld [vmem:[%s6938_s0 + $0x18] sm:$0xff] }
 0x310   :  { %5137 = verf.f32 %v3962_v13  ;;  %v3957_v51 = vmul.f32 0.5, %v4670_v16  ;;  %v3956_v37 = vmul.f32 0.5, %v4667_v19  ;;  %v3958_v60 = vmul.f32 0.5, %v4671_v20  ;;  %v5158_v14 = vld [vmem:[%s6938_s0 + $0x38] sm:$0xff] }
 0x311   :  { %5139 = verf.f32 %v3963_v21 }
 0x312   :  { %5141 = verf.f32 %v3965_v22 }
 0x313   :  { %5143 = verf.f32 %v3964_v23 }
 0x314   :  { %5145 = verf.f32 %v3966_v24 }
 0x317   :  { %v5132_v26 = vpop.eup %5131 }
 0x318   :  { %v5134_v27 = vpop.eup %5133  ;;  %v3975_v29 = vadd.f32 1.0, %v5132_v26 }
 0x319   :  { %v5136_v28 = vpop.eup %5135  ;;  %v3977_v38 = vadd.f32 1.0, %v5134_v27 }
 0x31a   :  { %v5138_v39 = vpop.eup %5137  ;;  %v3983_v40 = vmul.f32 %v3975_v29, %v3951_v30  ;;  %v3976_v32 = vadd.f32 1.0, %v5136_v28 }
 0x31b   :  { %v5140_v43 = vpop.eup %5139  ;;  %v3985_v44 = vmul.f32 %v3977_v38, %v3953_v36  ;;  %v3978_v45 = vadd.f32 1.0, %v5138_v39 }
 0x31c   :  { %v5142_v46 = vpop.eup %5141  ;;  %v3984_v47 = vmul.f32 %v3976_v32, %v3952_v41  ;;  %v3979_v15 = vadd.f32 1.0, %v5140_v43  ;;  %v3991_v50 = vadd.f32 %v5151_v49, %v3983_v40 }
 0x31d   :  { %v5144_v58 = vpop.eup %5143  ;;  %v3981_v52 = vadd.f32 1.0, %v5142_v46  ;;  %v3986_v56 = vmul.f32 %v3978_v45, %v3954_v42  ;;  %v3993_v63 = vadd.f32 %v5153_v62, %v3985_v44 }
 0x31e   :  { %v5146_v54 = vpop.eup %5145  ;;  %v3987_v25 = vmul.f32 %v3979_v15, %v3955_v48  ;;  %v3980_v55 = vadd.f32 1.0, %v5144_v58  ;;  %v3992_v59 = vadd.f32 %v5152_v57, %v3984_v47 }
 0x31f   :  { %v3982_v61 = vadd.f32 1.0, %v5146_v54  ;;  %v3989_v2 = vmul.f32 %v3981_v52, %v3957_v51  ;;  %v3994_v8 = vadd.f32 %v5156_v53, %v3986_v56  ;;  %v4082_v56 = vld [vmem:[%s6944_s6] sm:$0xf] }
 0x320   :  { %v3995_v1 = vadd.f32 %v5154_v0, %v3987_v25  ;;  %v3988_v3 = vmul.f32 %v3980_v55, %v3956_v37  ;;  %v3999_v4 = vadd.f32 %v3992_v59, %v3991_v50  ;;  %v4052_v25 = vld [vmem:[%s6943_s5] sm:$0xf]  ;;  %s5183_s5 = smov [#allocation2]  }
 0x321   :  { %v3990_v7 = vmul.f32 %v3982_v61, %v3958_v60  ;;  %v3997_v12 = vadd.f32 %v5157_v11, %v3989_v2  ;;  %v4057_v55 = vrot.slane %v4052_v25, %v6243_v31  ;;  %v4065_v57 = vrot.slane %v4052_v25, %v6251_v33  ;;  %s4125_s6 = sshll.u32 %s5183_s5, 4  ;;  %s4126_s6 = int_to_ptr.vmem [resolvable:$true] %s4125_s6 }
 0x322   :  { %v3996_v6 = vadd.f32 %v5155_v5, %v3988_v3  ;;  %v4000_v9 = vadd.f32 %v3999_v4, %v3993_v63  ;;  %v4069_v60 = vrot.slane %v4052_v25, %v6257_v35  ;;  %v4087_v2 = vrot.slane %v4082_v56, %v6243_v31  ;;  %s5159_s12 = scalar_lea.vmem %s4126_s6, 1024  ;;  %p5164_p1 = scmp.lt.s32.totalorder %s4126_s6, %s4126_s6 }
 0x323   :  { %v3998_v16 = vadd.f32 %v5158_v14, %v3990_v7  ;;  %v4095_v3 = vrot.slane %v4082_v56, %v6251_v33  ;;  %v4091_v4 = vrot.slane %v4082_v56, %v6254_v34  ;;  %v4099_v5 = vrot.slane %v4082_v56, %v6257_v35  ;;  %p5160_p0 = scmp.ne.s32.totalorder %s4126_s6, %s5159_s12  ;;  %p5165_p2 = scmp.lt.s32.totalorder %s5159_s12, %s5159_s12 }
 0x324   :  { %v4001_v10 = vadd.f32 %v4000_v9, %v3994_v8  ;;  %v4004_v13 = vadd.f32 %v3996_v6, %v3995_v1 }
 0x325   :  { %p5166_p3 = por %p5165_p2, %p5164_p1 }
 0x326   :  { %4002 = vadd.xlane.f32.xlu0 %v4001_v10  ;;  %v4005_v17 = vadd.f32 %v4004_v13, %v3997_v12 }
 0x327   :  { %p5167_p4 = pnand %p5166_p3, %p5160_p0 }
 0x328   :  { %v4006_v18 = vadd.f32 %v4005_v17, %v3998_v16 }
 0x32a   :  { %4007 = vadd.xlane.f32.xlu0 %v4006_v18 }
 0x3b3   :  { %v4003_v19 = vpop.xlane.xlu0 %4002 }
 0x3b4   :  { %v4010_v20 = vmul.f32 0.001953125, %v4003_v19 }
 0x3b6   :  { %v4012_v21 = vsub.f32 %v3991_v50, %v4010_v20  ;;  %v4013_v22 = vsub.f32 %v3992_v59, %v4010_v20  ;;  %v4014_v23 = vsub.f32 %v3993_v63, %v4010_v20  ;;  %v4015_v26 = vsub.f32 %v3994_v8, %v4010_v20 }
 0x3b7   :  { %v4008_v24 = vpop.xlane.xlu0 %4007  ;;  %v4061_v59 = vrot.slane %v4052_v25, %v6254_v34 }
 0x3b8   :  { %v4011_v27 = vmul.f32 0.001953125, %v4008_v24  ;;  %v4020_v30 = vmul.f32 %v4012_v21, %v4012_v21  ;;  %v4021_v29 = vmul.f32 %v4013_v22, %v4013_v22  ;;  %v4022_v28 = vmul.f32 %v4014_v23, %v4014_v23 }
 0x3b9   :  { %v4023_v41 = vmul.f32 %v4015_v26, %v4015_v26 }
 0x3ba   :  { %v4016_v36 = vsub.f32 %v3995_v1, %v4011_v27  ;;  %v4017_v38 = vsub.f32 %v3996_v6, %v4011_v27  ;;  %v4028_v39 = vadd.f32 %v4021_v29, %v4020_v30  ;;  %v4018_v40 = vsub.f32 %v3997_v12, %v4011_v27 }
 0x3bb   :  { %v4019_v43 = vsub.f32 %v3998_v16, %v4011_v27 }
 0x3bc   :  { %v4029_v32 = vadd.f32 %v4028_v39, %v4022_v28  ;;  %v4024_v44 = vmul.f32 %v4016_v36, %v4016_v36  ;;  %v4025_v42 = vmul.f32 %v4017_v38, %v4017_v38  ;;  %v4026_v46 = vmul.f32 %v4018_v40, %v4018_v40 }
 0x3bd   :  { %v4027_v48 = vmul.f32 %v4019_v43, %v4019_v43 }
 0x3be   :  { %v4030_v45 = vadd.f32 %v4029_v32, %v4023_v41  ;;  %v4033_v47 = vadd.f32 %v4025_v42, %v4024_v44 }
 0x3c0   :  { %4031 = vadd.xlane.f32.xlu1 %v4030_v45  ;;  %v4034_v15 = vadd.f32 %v4033_v47, %v4026_v46 }
 0x3c2   :  { %v4035_v49 = vadd.f32 %v4034_v15, %v4027_v48 }
 0x3c4   :  { %4036 = vadd.xlane.f32.xlu1 %v4035_v49 }
 0x44d   :  { %v4032_v50 = vpop.xlane.xlu1 %4031 }
 0x44e   :  { %v4038_v58 = vmul.f32 0.001953125, %v4032_v50 }
 0x450   :  { %v4040_v51 = vadd.f32 1e-05, %v4038_v58 }
 0x451   :  { %v4037_v52 = vpop.xlane.xlu1 %4036 }
 0x452   :  { %5147 = vrsqrt.f32 %v4040_v51  ;;  %v4039_v37 = vmul.f32 0.001953125, %v4037_v52 }
 0x454   :  { %v4041_v54 = vadd.f32 1e-05, %v4039_v37 }
 0x456   :  { %5149 = vrsqrt.f32 %v4041_v54 }
 0x45c   :  { %v5148_v61 = vpop.eup %5147 }
 0x45d   :  { %v4044_v62 = vmul.f32 %v5148_v61, %v4012_v21  ;;  %v4045_v63 = vmul.f32 %v5148_v61, %v4013_v22  ;;  %v4046_v0 = vmul.f32 %v5148_v61, %v4014_v23  ;;  %v4047_v1 = vmul.f32 %v5148_v61, %v4015_v26 }
 0x45f   :  { %v4074_v6 = vmul.f32 %v4057_v55, %v4044_v62  ;;  %v4075_v7 = vmul.f32 %v4061_v59, %v4045_v63  ;;  %v4076_v53 = vmul.f32 %v4065_v57, %v4046_v0  ;;  %v4077_v8 = vmul.f32 %v4069_v60, %v4047_v1 }
 0x460   :  { %v5150_v9 = vpop.eup %5149 }
 0x461   :  { %v4048_v10 = vmul.f32 %v5150_v9, %v4016_v36  ;;  %v4049_v11 = vmul.f32 %v5150_v9, %v4017_v38  ;;  %v4050_v12 = vmul.f32 %v5150_v9, %v4018_v40  ;;  %v4051_v13 = vmul.f32 %v5150_v9, %v4019_v43 }
 0x462   :  { %v4104_v14 = vadd.f32 %v4087_v2, %v4074_v6  ;;  %v4105_v16 = vadd.f32 %v4091_v4, %v4075_v7  ;;  %v4106_v17 = vadd.f32 %v4095_v3, %v4076_v53  ;;  %v4107_v18 = vadd.f32 %v4099_v5, %v4077_v8 }
 0x463   :  { %v4078_v31 = vmul.f32 %v4057_v55, %v4048_v10  ;;  %v4079_v33 = vmul.f32 %v4061_v59, %v4049_v11  ;;  %v4080_v34 = vmul.f32 %v4065_v57, %v4050_v12  ;;  %v4081_v19 = vmul.f32 %v4069_v60, %v4051_v13 }
 0x464   :  { %4112 = vst [vmem:[#allocation2] sm:$0xff] %v4104_v14  ;;  %4113 = vst [vmem:[#allocation2 + $0x8] sm:$0xff] %v4105_v16 }
 0x465   :  { %4114 = vst [vmem:[#allocation2 + $0x10] sm:$0xff] %v4106_v17  ;;  %4115 = vst [vmem:[#allocation2 + $0x18] sm:$0xff] %v4107_v18  ;;  %v4108_v35 = vadd.f32 %v4087_v2, %v4078_v31  ;;  %v4109_v20 = vadd.f32 %v4091_v4, %v4079_v33  ;;  %v4110_v21 = vadd.f32 %v4095_v3, %v4080_v34 }
 0x466   :  { %v4111_v22 = vadd.f32 %v4099_v5, %v4081_v19 }
 0x467   :  { %4116 = vst [vmem:[#allocation2 + $0x20] sm:$0xff] %v4108_v35  ;;  %4117 = vst [vmem:[#allocation2 + $0x28] sm:$0xff] %v4109_v20 }
 0x468   :  { %4118 = vst [vmem:[#allocation2 + $0x30] sm:$0xff] %v4110_v21  ;;  %4119 = vst [vmem:[#allocation2 + $0x38] sm:$0xff] %v4111_v22 }
 0x469   :  { %5170 = shalt.err (!%p5167_p4)
}
 0x46a   :  { %s5171_s14 = scalar_lea.hbm %s6945_s7, 1024 }
 0x46b   :  { %p5172_p5 = scmp.ne.s32.totalorder %s6945_s7, %s5171_s14  ;;  %p5175_p6 = scmp.lt.u32.totalorder %s5171_s14, %s6945_s7 }
 0x46d   :  { %p5177_p7 = pnand %p5175_p6, %p5172_p5 }
 0x46f   :  { %5180 = shalt.err (!%p5177_p7)
}
 0x470   :  { %s5184_s3 = smov 512   ;;  %s5185_s4 = smov 32  }
 0x471   :  { %4131 = dma.vmem_to_hbm [thread:$0]  %s4126_s6, 1024, %s6945_s7, [#allocation3], %s5184_s3, %s5184_s3, %s5185_s4  }
 0x472   :  { %5181 = dma.done.wait [#allocation3], 1024  }
 0x473   :  { %5182 = vsyncadd [#allocation3], 4294966272 }
 0x474   :  { %4135 = vsyncpa [#allocation3], 1 }

</bundles_post_ra>
